<compile_context>
chip_gen: v7x
topology: tpu7x:2x2x1
jax: 0.10.0
libtpu: 0.0.40
codegen_flags: <defaults>
</compile_context>

<pallas_src>
import functools
import math

import jax
import jax.numpy as jnp
from jax.experimental import pallas as pl
from jax.experimental.pallas import tpu as pltpu


def _round_up(v, m):
    return ((v + m - 1) // m) * m


def _vmem_limit_bytes(est_bytes):
    # v7x has 64 MiB VMEM / TensorCore -> leave compiler headroom; v5e/v6e have 128 MiB.
    ceiling = 56 * 2**20
    try:
        if pltpu.get_tpu_info().vmem_capacity_bytes > 96 * 2**20:
            ceiling = 100 * 2**20
    except Exception:
        pass
    return int(min(max(4 * est_bytes, 32 * 2**20), ceiling))


# --------------------------------------------------------------------------
# Kernel 1: H = X W + b  (per layer, bf16 output, streamed by node-row tile)
# --------------------------------------------------------------------------
def _linear_kernel(x_ref, w_ref, b_ref, h_ref):
    # bf16 operands, f32 MXU accumulation, bias added in f32, stored as bf16.
    h_ref[...] = (
        jnp.dot(x_ref[...].astype(jnp.bfloat16), w_ref[...],
                preferred_element_type=jnp.float32)
        + b_ref[...]
    ).astype(h_ref.dtype)


def _linear(x, w, b, *, row_tile):
    """x:(Np,Dp) f32   w:(Dp,Dp) bf16   b:(1,Dp) f32  ->  H:(Np,Dp) bf16."""
    n_pad, d_pad = x.shape
    n_rows = n_pad // row_tile
    flops = 2 * n_pad * d_pad * d_pad
    bytes_accessed = (n_pad * d_pad * 4 + d_pad * d_pad * w.dtype.itemsize
                      + d_pad * 4 + n_pad * d_pad * 2)
    vmem_est = 2 * (row_tile * d_pad * 4 + d_pad * d_pad * 2 + d_pad * 4
                    + row_tile * d_pad * 2)
    return pl.pallas_call(
        _linear_kernel,
        out_shape=jax.ShapeDtypeStruct((n_pad, d_pad), jnp.bfloat16),
        grid=(n_rows,),
        in_specs=[
            pl.BlockSpec((row_tile, d_pad), lambda i: (i, 0)),  # X row tile
            pl.BlockSpec((d_pad, d_pad), lambda i: (0, 0)),     # W_t (bf16, resident)
            pl.BlockSpec((1, d_pad), lambda i: (0, 0)),         # b_t
        ],
        out_specs=pl.BlockSpec((row_tile, d_pad), lambda i: (i, 0)),
        compiler_params=pltpu.CompilerParams(
            dimension_semantics=("parallel",),
            vmem_limit_bytes=_vmem_limit_bytes(vmem_est)),
        cost_estimate=pl.CostEstimate(flops=int(flops), transcendentals=0,
                                      bytes_accessed=int(bytes_accessed)),
    )(x, w, b)


# --------------------------------------------------------------------------
# Kernel 2: out = l2norm( X + ReLU( S_eff @ H ) ), contraction tiled over nodes
# --------------------------------------------------------------------------
def _propagate_kernel(s_ref, h_ref, xrow_ref, o_ref):
    """Grid: (node row tile i ["parallel"], contraction column tile j ["arbitrary"])."""
    j = pl.program_id(1)

    # bf16 x bf16 -> f32 accumulation on the MXU; partial sums stay f32 in the
    # resident output block.  No zero-init / extra read-modify-write at j==0.
    partial = jnp.dot(s_ref[...], h_ref[...], preferred_element_type=jnp.float32)

    @pl.when(j == 0)
    def _():
        o_ref[...] = partial

    @pl.when(j > 0)
    def _():
        o_ref[...] += partial

    @pl.when(j == pl.num_programs(1) - 1)
    def _():
        # Residual + ReLU, then F.normalize(p=2, dim=-1):
        #   y / max(||y||, 1e-12)  ==  y * rsqrt(max(||y||^2, 1e-24))
        y = xrow_ref[...] + jnp.maximum(o_ref[...], 0.0)
        ss = jnp.sum(y * y, axis=-1, keepdims=True)
        o_ref[...] = (y * jax.lax.rsqrt(jnp.maximum(ss, 1e-24))).astype(o_ref.dtype)


def _propagate(s_eff, h, x, *, row_tile, col_tile):
    """s_eff:(Np,Np) bf16   h:(Np,Dp) bf16   x:(Np,Dp) f32  ->  (Np,Dp) f32."""
    n_pad, d_pad = x.shape
    n_rows = n_pad // row_tile
    n_cols = n_pad // col_tile
    flops = 2 * n_pad * n_pad * d_pad
    bytes_accessed = (n_pad * n_pad * s_eff.dtype.itemsize           # S_eff stream
                      + n_rows * n_pad * d_pad * h.dtype.itemsize    # H re-streamed per row tile
                      + 2 * n_pad * d_pad * 4)                       # X residual + out
    vmem_est = (2 * row_tile * col_tile * s_eff.dtype.itemsize       # S tile, double-buffered
                + 2 * col_tile * d_pad * h.dtype.itemsize            # H tile, double-buffered
                + 2 * row_tile * d_pad * 4                           # X row tile
                + 2 * row_tile * d_pad * 4)                          # output block
    return pl.pallas_call(
        _propagate_kernel,
        out_shape=jax.ShapeDtypeStruct((n_pad, d_pad), x.dtype),
        grid=(n_rows, n_cols),
        in_specs=[
            pl.BlockSpec((row_tile, col_tile), lambda i, j: (i, j)),  # S_eff tile (bf16)
            pl.BlockSpec((col_tile, d_pad), lambda i, j: (j, 0)),     # H tile (bf16)
            pl.BlockSpec((row_tile, d_pad), lambda i, j: (i, 0)),     # X row tile (residual)
        ],
        out_specs=pl.BlockSpec((row_tile, d_pad), lambda i, j: (i, 0)),
        compiler_params=pltpu.CompilerParams(
            dimension_semantics=("parallel", "arbitrary"),
            vmem_limit_bytes=_vmem_limit_bytes(vmem_est)),
        cost_estimate=pl.CostEstimate(flops=int(flops),
                                      transcendentals=int(n_pad),
                                      bytes_accessed=int(bytes_accessed)),
    )(s_eff, h, x)


# --------------------------------------------------------------------------
# Full stage
# --------------------------------------------------------------------------
@functools.partial(jax.jit, static_argnames=("num_layers", "row_tile", "col_tile"))
def alpha_k_gnn_stage(x, s, weights, biases, alpha_logits, *, num_layers,
                      row_tile=256, col_tile=256):
    """Full AlphaKGNNStage forward: sequential layers, shared softmax(alpha).
       x:(N,D)  s:(max_k,N,N)  weights:(L,D,D)  biases:(L,1,D)  alpha_logits:(max_k,)"""
    n, d = x.shape
    d_pad = _round_up(d, 128)                        # lane-dense feature dim
    assert row_tile % 8 == 0, "row_tile must be a multiple of 8"
    assert col_tile % 128 == 0, "col_tile must be a multiple of 128 (S-tile lane dim)"
    n_pad = _round_up(n, math.lcm(row_tile, col_tile))

    # Zero padding is exact for this forward pass: padded S rows/columns are
    # zero, so padded-node contributions (including their biased H rows) are
    # annihilated; padded feature columns stay zero through the l2norm.
    x_p = jnp.pad(x, ((0, n_pad - n), (0, d_pad - d)))
    s_p = jnp.pad(s, ((0, 0), (0, n_pad - n), (0, n_pad - n)))
    w_p = jnp.pad(weights, ((0, 0), (0, d_pad - d), (0, d_pad - d))).astype(jnp.bfloat16)
    b_p = jnp.pad(biases, ((0, 0), (0, 0), (0, d_pad - d)))

    # Fold the (layer-shared) softmax(alpha) hop mixture into S once: f32 build,
    # single bf16 cast.  Cuts the dominant S HBM stream by max_k x per layer.
    alpha = jax.nn.softmax(alpha_logits, axis=0)     # F.softmax(self.alpha, dim=0)
    s_eff = jnp.tensordot(alpha, s_p, axes=1).astype(jnp.bfloat16)
    # TODO(synk): quantize S_eff to int8 (v5e/v6e) or fp8 e4m3 (v7x) to halve the
    # S stream further; kept bf16 to track the f32 PyTorch module within tolerance.
    # TODO(synk): cfg.ring_dataset.fixed_alpha would freeze alpha to constants; the
    # forward path is identical.
    # TODO(synk): for ring graphs each S_k has 2 nonzeros/row; pltpu.roll(H, +-k)
    # would remove the dense S stream entirely — dense path kept for general graphs.

    for t in range(num_layers):
        h = _linear(x_p, w_p[t], b_p[t], row_tile=row_tile)     # H^t = X W^t + b^t (bf16)
        x_p = _propagate(s_eff, h, x_p, row_tile=row_tile, col_tile=col_tile)
    return x_p[:n, :d]


def build_ring_khop_operators(num_nodes, max_k, dtype=jnp.float32):
    """Dense GCN-normalized k-hop adjacencies S_k from a ring-graph
    edge_index / edge_attr (edge_attr == k selects the hop-k edges)."""
    idx = jnp.arange(num_nodes)
    ops = []
    for k in range(1, max_k + 1):
        a = jnp.zeros((num_nodes, num_nodes), dtype)
        a = a.at[idx, (idx + k) % num_nodes].set(1.0)
        a = a.at[idx, (idx - k) % num_nodes].set(1.0)
        deg = jnp.sum(a, axis=-1)
        d_inv_sqrt = jnp.where(deg > 0, 1.0 / jnp.sqrt(deg), 0.0)
        ops.append(d_inv_sqrt[:, None] * a * d_inv_sqrt[None, :])
    return jnp.stack(ops, axis=0)


def reference_forward(x, s, weights, biases, alpha_logits, num_layers):
    """Pure-JAX reference mirroring the kernel's precision choices
    (alpha folded into a bf16 S_eff, bf16 matmul operands, f32 accumulation,
    f32 residual / l2norm)."""
    alpha = jax.nn.softmax(alpha_logits, axis=0)
    s_eff = jnp.tensordot(alpha, s, axes=1).astype(jnp.bfloat16)
    for t in range(num_layers):
        w_bf = weights[t].astype(jnp.bfloat16)
        h = (jnp.dot(x.astype(jnp.bfloat16), w_bf,
                     preferred_element_type=jnp.float32) + biases[t]).astype(jnp.bfloat16)
        acc = jnp.dot(s_eff, h, preferred_element_type=jnp.float32)
        y = x + jnp.maximum(acc, 0.0)
        ss = jnp.sum(y * y, axis=-1, keepdims=True)
        x = y * jax.lax.rsqrt(jnp.maximum(ss, 1e-24))
    return x


if __name__ == "__main__":
    # Small shapes, but lane-dense D and a 2x2 (row, contraction) grid.
    N = 256          # nodes
    D = 128          # dim_in == dim_out (residual requires equal dims)
    NUM_LAYERS = 2
    MAX_K = 3        # r_bar: hops considered at every layer
    ROW_TILE = 128   # node row tile     -> propagate grid = (2, 2)
    COL_TILE = 128   # contraction tile

    key = jax.random.PRNGKey(0)
    kx, kw, kb, ka = jax.random.split(key, 4)

    x = jax.random.normal(kx, (N, D), jnp.float32)
    s = build_ring_khop_operators(N, MAX_K)

    scale = 1.0 / jnp.sqrt(jnp.float32(D))
    weights = jax.random.normal(kw, (NUM_LAYERS, D, D), jnp.float32) * scale
    biases = 0.01 * jax.random.normal(kb, (NUM_LAYERS, 1, D), jnp.float32)
    alpha_logits = jax.random.normal(ka, (MAX_K,), jnp.float32)

    out = alpha_k_gnn_stage(x, s, weights, biases, alpha_logits,
                            num_layers=NUM_LAYERS, row_tile=ROW_TILE,
                            col_tile=COL_TILE)
    out = jax.block_until_ready(out)

    ref = reference_forward(x, s, weights, biases, alpha_logits, NUM_LAYERS)
    assert out.shape == (N, D)
    max_err = float(jnp.max(jnp.abs(out - ref)))
    assert jnp.allclose(out, ref, atol=1e-4, rtol=1e-4), (
        f"mismatch vs reference (max abs err {max_err:.3e})")

    print("KERNEL_OK")
</pallas_src>

<mosaic_0001>
module attributes {stable_mosaic.version = 11 : i64} {
  func.func @_linear_kernel(%arg0: i32, %arg1: memref<128x128xf32, #tpu.memory_space<vmem>>, %arg2: memref<128x128xbf16, #tpu.memory_space<vmem>>, %arg3: memref<1x128xf32, #tpu.memory_space<vmem>>, %arg4: memref<128x128xbf16, #tpu.memory_space<vmem>>) attributes {dimension_semantics = [#tpu.dimension_semantics<parallel>], iteration_bounds = array<i64: 2>, scalar_prefetch = 0 : i64, scratch_operands = 0 : i64, tpu.core_type = #tpu.core_type<tc>, window_params = [{transform_indices = @transform_0, window_bounds = array<i64: 128, 128>}, {pipeline_mode = #tpu.pipeline_mode<synchronous>, transform_indices = @transform_1, window_bounds = array<i64: 128, 128>}, {pipeline_mode = #tpu.pipeline_mode<synchronous>, transform_indices = @transform_2, window_bounds = array<i64: 1, 128>}, {transform_indices = @transform_3, window_bounds = array<i64: 128, 128>}]} {
    %c0 = arith.constant 0 : index
    %c0_0 = arith.constant 0 : index
    %0 = vector.load %arg1[%c0, %c0_0] : memref<128x128xf32, #tpu.memory_space<vmem>>, vector<128x128xf32>
    %1 = arith.truncf %0 : vector<128x128xf32> to vector<128x128xbf16>
    %c0_1 = arith.constant 0 : index
    %c0_2 = arith.constant 0 : index
    %2 = vector.load %arg2[%c0_1, %c0_2] : memref<128x128xbf16, #tpu.memory_space<vmem>>, vector<128x128xbf16>
    %cst = arith.constant dense<0.000000e+00> : vector<128x128xf32>
    %3 = tpu.matmul %1, %2, %cst {dimension_numbers = #tpu.dot_dimension_numbers<[1], [0], [0], [1], [0, 0, 1, 1], [], []>} : vector<128x128xbf16>, vector<128x128xbf16>, vector<128x128xf32> -> vector<128x128xf32>
    %c0_3 = arith.constant 0 : index
    %c0_4 = arith.constant 0 : index
    %4 = vector.load %arg3[%c0_3, %c0_4] : memref<1x128xf32, #tpu.memory_space<vmem>>, vector<1x128xf32>
    %5 = vector.broadcast %4 : vector<1x128xf32> to vector<128x128xf32>
    %6 = arith.addf %3, %5 : vector<128x128xf32>
    %7 = arith.truncf %6 : vector<128x128xf32> to vector<128x128xbf16>
    %c0_5 = arith.constant 0 : index
    %c0_6 = arith.constant 0 : index
    %8 = vector.load %arg4[%c0_5, %c0_6] : memref<128x128xbf16, #tpu.memory_space<vmem>>, vector<128x128xbf16>
    tpu.vector_store %arg4[%c0_5, %c0_6], %7 {strides = array<i32>} : memref<128x128xbf16, #tpu.memory_space<vmem>>, vector<128x128xbf16>,
    return
  }
  func.func @transform_0(%arg0: i32) -> (i32, i32) {
    %c0_i32 = arith.constant 0 : i32
    %c0_i32_0 = arith.constant 0 : i32
    return %arg0, %c0_i32 : i32, i32
  }
  func.func @transform_1(%arg0: i32) -> (i32, i32) {
    %c0_i32 = arith.constant 0 : i32
    %c0_i32_0 = arith.constant 0 : i32
    %c0_i32_1 = arith.constant 0 : i32
    return %c0_i32, %c0_i32_0 : i32, i32
  }
  func.func @transform_2(%arg0: i32) -> (i32, i32) {
    %c0_i32 = arith.constant 0 : i32
    %c0_i32_0 = arith.constant 0 : i32
    %c0_i32_1 = arith.constant 0 : i32
    return %c0_i32, %c0_i32_0 : i32, i32
  }
  func.func @transform_3(%arg0: i32) -> (i32, i32) {
    %c0_i32 = arith.constant 0 : i32
    %c0_i32_0 = arith.constant 0 : i32
    return %arg0, %c0_i32 : i32, i32
  }
}

module attributes {stable_mosaic.version = 11 : i64} {
  func.func @_propagate_kernel(%arg0: i32, %arg1: i32, %arg2: memref<128x128xbf16, #tpu.memory_space<vmem>>, %arg3: memref<128x128xbf16, #tpu.memory_space<vmem>>, %arg4: memref<128x128xf32, #tpu.memory_space<vmem>>, %arg5: memref<128x128xf32, #tpu.memory_space<vmem>>) attributes {dimension_semantics = [#tpu.dimension_semantics<parallel>, #tpu.dimension_semantics<arbitrary>], iteration_bounds = array<i64: 2, 2>, scalar_prefetch = 0 : i64, scratch_operands = 0 : i64, tpu.core_type = #tpu.core_type<tc>, window_params = [{transform_indices = @transform_0, window_bounds = array<i64: 128, 128>}, {transform_indices = @transform_1, window_bounds = array<i64: 128, 128>}, {transform_indices = @transform_2, window_bounds = array<i64: 128, 128>}, {transform_indices = @transform_3, window_bounds = array<i64: 128, 128>}]} {
    %c0 = arith.constant 0 : index
    %c0_0 = arith.constant 0 : index
    %0 = vector.load %arg2[%c0, %c0_0] : memref<128x128xbf16, #tpu.memory_space<vmem>>, vector<128x128xbf16>
    %c0_1 = arith.constant 0 : index
    %c0_2 = arith.constant 0 : index
    %1 = vector.load %arg3[%c0_1, %c0_2] : memref<128x128xbf16, #tpu.memory_space<vmem>>, vector<128x128xbf16>
    %cst = arith.constant dense<0.000000e+00> : vector<128x128xf32>
    %2 = tpu.matmul %0, %1, %cst {dimension_numbers = #tpu.dot_dimension_numbers<[1], [0], [0], [1], [0, 0, 1, 1], [], []>} : vector<128x128xbf16>, vector<128x128xbf16>, vector<128x128xf32> -> vector<128x128xf32>
    %c0_i32 = arith.constant 0 : i32
    %3 = arith.cmpi eq, %arg1, %c0_i32 : i32
    %4 = arith.extui %3 : i1 to i32
    %c0_i32_3 = arith.constant 0 : i32
    %5 = arith.cmpi ne, %4, %c0_i32_3 : i32
    scf.if %5 {
      %c0_7 = arith.constant 0 : index
      %c0_8 = arith.constant 0 : index
      %12 = vector.load %arg5[%c0_7, %c0_8] : memref<128x128xf32, #tpu.memory_space<vmem>>, vector<128x128xf32>
      tpu.vector_store %arg5[%c0_7, %c0_8], %2 {strides = array<i32>} : memref<128x128xf32, #tpu.memory_space<vmem>>, vector<128x128xf32>,
    } else {
    }
    %c0_i32_4 = arith.constant 0 : i32
    %6 = arith.cmpi sgt, %arg1, %c0_i32_4 : i32
    %7 = arith.extui %6 : i1 to i32
    %c0_i32_5 = arith.constant 0 : i32
    %8 = arith.cmpi ne, %7, %c0_i32_5 : i32
    scf.if %8 {
      %c0_7 = arith.constant 0 : index
      %c0_8 = arith.constant 0 : index
      %12 = vector.load %arg5[%c0_7, %c0_8] : memref<128x128xf32, #tpu.memory_space<vmem>>, vector<128x128xf32>
      %13 = arith.addf %12, %2 : vector<128x128xf32>
      %c0_9 = arith.constant 0 : index
      %c0_10 = arith.constant 0 : index
      %14 = vector.load %arg5[%c0_9, %c0_10] : memref<128x128xf32, #tpu.memory_space<vmem>>, vector<128x128xf32>
      tpu.vector_store %arg5[%c0_9, %c0_10], %13 {strides = array<i32>} : memref<128x128xf32, #tpu.memory_space<vmem>>, vector<128x128xf32>,
    } else {
    }
    %c1_i32 = arith.constant 1 : i32
    %9 = arith.cmpi eq, %arg1, %c1_i32 : i32
    %10 = arith.extui %9 : i1 to i32
    %c0_i32_6 = arith.constant 0 : i32
    %11 = arith.cmpi ne, %10, %c0_i32_6 : i32
    scf.if %11 {
      %c0_7 = arith.constant 0 : index
      %c0_8 = arith.constant 0 : index
      %12 = vector.load %arg4[%c0_7, %c0_8] : memref<128x128xf32, #tpu.memory_space<vmem>>, vector<128x128xf32>
      %c0_9 = arith.constant 0 : index
      %c0_10 = arith.constant 0 : index
      %13 = vector.load %arg5[%c0_9, %c0_10] : memref<128x128xf32, #tpu.memory_space<vmem>>, vector<128x128xf32>
      %cst_11 = arith.constant 0.000000e+00 : f32
      %14 = vector.broadcast %cst_11 : f32 to vector<128x128xf32>
      %15 = arith.maximumf %13, %14 : vector<128x128xf32>
      %16 = arith.addf %12, %15 : vector<128x128xf32>
      %17 = arith.mulf %16, %16 : vector<128x128xf32>
      %cst_12 = arith.constant dense<0.000000e+00> : vector<128xf32>
      %18 = vector.multi_reduction <add>, %17, %cst_12 [1] : vector<128x128xf32> to vector<128xf32>
      %19 = vector.shape_cast %18 : vector<128xf32> to vector<128x1xf32>
      %cst_13 = arith.constant 1.000000e-24 : f32
      %20 = vector.broadcast %cst_13 : f32 to vector<128x1xf32>
      %21 = arith.maximumf %19, %20 : vector<128x1xf32>
      %22 = math.rsqrt %21 : vector<128x1xf32>
      %23 = vector.broadcast %22 : vector<128x1xf32> to vector<128x128xf32>
      %24 = arith.mulf %16, %23 : vector<128x128xf32>
      %c0_14 = arith.constant 0 : index
      %c0_15 = arith.constant 0 : index
      %25 = vector.load %arg5[%c0_14, %c0_15] : memref<128x128xf32, #tpu.memory_space<vmem>>, vector<128x128xf32>
      tpu.vector_store %arg5[%c0_14, %c0_15], %24 {strides = array<i32>} : memref<128x128xf32, #tpu.memory_space<vmem>>, vector<128x128xf32>,
    } else {
    }
    return
  }
  func.func @transform_0(%arg0: i32, %arg1: i32) -> (i32, i32) {
    %c0_i32 = arith.constant 0 : i32
    return %arg0, %arg1 : i32, i32
  }
  func.func @transform_1(%arg0: i32, %arg1: i32) -> (i32, i32) {
    %c0_i32 = arith.constant 0 : i32
    %c0_i32_0 = arith.constant 0 : i32
    return %arg1, %c0_i32 : i32, i32
  }
  func.func @transform_2(%arg0: i32, %arg1: i32) -> (i32, i32) {
    %c0_i32 = arith.constant 0 : i32
    %c0_i32_0 = arith.constant 0 : i32
    return %arg0, %c0_i32 : i32, i32
  }
  func.func @transform_3(%arg0: i32, %arg1: i32) -> (i32, i32) {
    %c0_i32 = arith.constant 0 : i32
    %c0_i32_0 = arith.constant 0 : i32
    return %arg0, %c0_i32 : i32, i32
  }
}

module attributes {stable_mosaic.version = 11 : i64} {
  func.func @_propagate_kernel(%arg0: i32, %arg1: i32, %arg2: memref<128x128xbf16, #tpu.memory_space<vmem>>, %arg3: memref<128x128xbf16, #tpu.memory_space<vmem>>, %arg4: memref<128x128xf32, #tpu.memory_space<vmem>>, %arg5: memref<128x128xf32, #tpu.memory_space<vmem>>) attributes {dimension_semantics = [#tpu.dimension_semantics<parallel>, #tpu.dimension_semantics<arbitrary>], iteration_bounds = array<i64: 2, 2>, scalar_prefetch = 0 : i64, scratch_operands = 0 : i64, tpu.core_type = #tpu.core_type<tc>, window_params = [{transform_indices = @transform_0, window_bounds = array<i64: 128, 128>}, {transform_indices = @transform_1, window_bounds = array<i64: 128, 128>}, {transform_indices = @transform_2, window_bounds = array<i64: 128, 128>}, {transform_indices = @transform_3, window_bounds = array<i64: 128, 128>}]} {
    %c0 = arith.constant 0 : index
    %c0_0 = arith.constant 0 : index
    %0 = vector.load %arg2[%c0, %c0_0] : memref<128x128xbf16, #tpu.memory_space<vmem>>, vector<128x128xbf16>
    %c0_1 = arith.constant 0 : index
    %c0_2 = arith.constant 0 : index
    %1 = vector.load %arg3[%c0_1, %c0_2] : memref<128x128xbf16, #tpu.memory_space<vmem>>, vector<128x128xbf16>
    %cst = arith.constant dense<0.000000e+00> : vector<128x128xf32>
    %2 = tpu.matmul %0, %1, %cst {dimension_numbers = #tpu.dot_dimension_numbers<[1], [0], [0], [1], [0, 0, 1, 1], [], []>} : vector<128x128xbf16>, vector<128x128xbf16>, vector<128x128xf32> -> vector<128x128xf32>
    %c0_i32 = arith.constant 0 : i32
    %3 = arith.cmpi eq, %arg1, %c0_i32 : i32
    %4 = arith.extui %3 : i1 to i32
    %c0_i32_3 = arith.constant 0 : i32
    %5 = arith.cmpi ne, %4, %c0_i32_3 : i32
    scf.if %5 {
      %c0_7 = arith.constant 0 : index
      %c0_8 = arith.constant 0 : index
      %12 = vector.load %arg5[%c0_7, %c0_8] : memref<128x128xf32, #tpu.memory_space<vmem>>, vector<128x128xf32>
      tpu.vector_store %arg5[%c0_7, %c0_8], %2 {strides = array<i32>} : memref<128x128xf32, #tpu.memory_space<vmem>>, vector<128x128xf32>,
    } else {
    }
    %c0_i32_4 = arith.constant 0 : i32
    %6 = arith.cmpi sgt, %arg1, %c0_i32_4 : i32
    %7 = arith.extui %6 : i1 to i32
    %c0_i32_5 = arith.constant 0 : i32
    %8 = arith.cmpi ne, %7, %c0_i32_5 : i32
    scf.if %8 {
      %c0_7 = arith.constant 0 : index
      %c0_8 = arith.constant 0 : index
      %12 = vector.load %arg5[%c0_7, %c0_8] : memref<128x128xf32, #tpu.memory_space<vmem>>, vector<128x128xf32>
      %13 = arith.addf %12, %2 : vector<128x128xf32>
      %c0_9 = arith.constant 0 : index
      %c0_10 = arith.constant 0 : index
      %14 = vector.load %arg5[%c0_9, %c0_10] : memref<128x128xf32, #tpu.memory_space<vmem>>, vector<128x128xf32>
      tpu.vector_store %arg5[%c0_9, %c0_10], %13 {strides = array<i32>} : memref<128x128xf32, #tpu.memory_space<vmem>>, vector<128x128xf32>,
    } else {
    }
    %c1_i32 = arith.constant 1 : i32
    %9 = arith.cmpi eq, %arg1, %c1_i32 : i32
    %10 = arith.extui %9 : i1 to i32
    %c0_i32_6 = arith.constant 0 : i32
    %11 = arith.cmpi ne, %10, %c0_i32_6 : i32
    scf.if %11 {
      %c0_7 = arith.constant 0 : index
      %c0_8 = arith.constant 0 : index
      %12 = vector.load %arg4[%c0_7, %c0_8] : memref<128x128xf32, #tpu.memory_space<vmem>>, vector<128x128xf32>
      %c0_9 = arith.constant 0 : index
      %c0_10 = arith.constant 0 : index
      %13 = vector.load %arg5[%c0_9, %c0_10] : memref<128x128xf32, #tpu.memory_space<vmem>>, vector<128x128xf32>
      %cst_11 = arith.constant 0.000000e+00 : f32
      %14 = vector.broadcast %cst_11 : f32 to vector<128x128xf32>
      %15 = arith.maximumf %13, %14 : vector<128x128xf32>
      %16 = arith.addf %12, %15 : vector<128x128xf32>
      %17 = arith.mulf %16, %16 : vector<128x128xf32>
      %cst_12 = arith.constant dense<0.000000e+00> : vector<128xf32>
      %18 = vector.multi_reduction <add>, %17, %cst_12 [1] : vector<128x128xf32> to vector<128xf32>
      %19 = vector.shape_cast %18 : vector<128xf32> to vector<128x1xf32>
      %cst_13 = arith.constant 1.000000e-24 : f32
      %20 = vector.broadcast %cst_13 : f32 to vector<128x1xf32>
      %21 = arith.maximumf %19, %20 : vector<128x1xf32>
      %22 = math.rsqrt %21 : vector<128x1xf32>
      %23 = vector.broadcast %22 : vector<128x1xf32> to vector<128x128xf32>
      %24 = arith.mulf %16, %23 : vector<128x128xf32>
      %c0_14 = arith.constant 0 : index
      %c0_15 = arith.constant 0 : index
      %25 = vector.load %arg5[%c0_14, %c0_15] : memref<128x128xf32, #tpu.memory_space<vmem>>, vector<128x128xf32>
      tpu.vector_store %arg5[%c0_14, %c0_15], %24 {strides = array<i32>} : memref<128x128xf32, #tpu.memory_space<vmem>>, vector<128x128xf32>,
    } else {
    }
    return
  }
  func.func @transform_0(%arg0: i32, %arg1: i32) -> (i32, i32) {
    %c0_i32 = arith.constant 0 : i32
    return %arg0, %arg1 : i32, i32
  }
  func.func @transform_1(%arg0: i32, %arg1: i32) -> (i32, i32) {
    %c0_i32 = arith.constant 0 : i32
    %c0_i32_0 = arith.constant 0 : i32
    return %arg1, %c0_i32 : i32, i32
  }
  func.func @transform_2(%arg0: i32, %arg1: i32) -> (i32, i32) {
    %c0_i32 = arith.constant 0 : i32
    %c0_i32_0 = arith.constant 0 : i32
    return %arg0, %c0_i32 : i32, i32
  }
  func.func @transform_3(%arg0: i32, %arg1: i32) -> (i32, i32) {
    %c0_i32 = arith.constant 0 : i32
    %c0_i32_0 = arith.constant 0 : i32
    return %arg0, %c0_i32 : i32, i32
  }
}

</mosaic_0001>

<bundles_post_ra>
// kernel: alpha_k_gnn_stage.7
= control target key start
LH: loop header
LB: loop body
LE: loop exit
PB: predicated region body
PF: predicated region fallthrough
CT: control target
= control target key end

     0   :  { %s1729_s0 = inlined_call_operand.vmem [shape: bf16[256,256], index: 0, kind: input, shape index: {}]   ;;  %s1730_s1 = inlined_call_operand.vmem [shape: bf16[256,128], index: 1, kind: input, shape index: {}]   ;;  %s1731_s2 = inlined_call_operand.vmem [shape: f32[256,128], index: 2, kind: input, shape index: {}]   ;;  %s1732_s3 = inlined_call_operand.hbm [shape: f32[256,128], index: 3, kind: output, shape index: {}]  }
   0x1   :  { %1734 = sst [smem:[#allocation6_spill]] %s1729_s0 }
   0x2   :  { %8 = vsyncpa [#allocation4], 0 }
   0x3   :  { %10 = vsyncpa [#allocation4 + $0x1], 0  ;;  %s1307_s12 = smov 0   ;;  %s1309_s13 = smov 0  }
   0x4   :  { %s1311_s14 = smov 0   ;;  %s1313_s15 = smov 0  }
   0x5   :  { %s1315_s16 = smov 0   ;;  %s1317_s17 = smov 0  }
   0x6   :  { %s1319_s18 = smov 0   ;;  %s1321_s19 = smov 0  }
   0x7   :  { %s1323_s20 = smov 0   ;;  %s1325_s21 = smov 0  }
   0x8 LB: > { %s930_s22 = sadd.s32 4294967295, %s1282_s21   ;;  %s931_s23 = sadd.s32 4294967294, %s1282_s21   ;;  %s1282_s21 = sphi %s1325_s21, %s16_s21   ;;  %s1278_s20 = sphi %s1323_s20, %s1748_s20   ;;  %s1274_s19 = sphi %s1321_s19, %s1747_s19   ;;  %s1270_s18 = sphi %s1319_s18, %s1746_s18   ;;  %s1266_s17 = sphi %s1317_s17, %s1745_s17   ;;  %s1262_s16 = sphi %s1315_s16, %s1744_s16   ;;  %s1258_s15 = sphi %s1313_s15, %s1743_s15   ;;  %s1254_s14 = sphi %s1311_s14, %s1742_s14   ;;  %s1250_s13 = sphi %s1309_s13, %s1741_s13   ;;  %s1246_s12 = sphi %s1307_s12, %s1740_s12  }
   0x9   : > { %s25_s24 = sadd.s32 1, %s1274_s19  ;;  %s28_s25 = sadd.s32 1, %s1278_s20 }
   0xa   : > { %p26_p0 = scmp.ge.s32.totalorder %s25_s24, 2  ;;  %s37_s26 = sadd.s32 1, %s1262_s16 }
   0xb   : > { %p44_p1 = scmp.ne.s32.totalorder %s1262_s16, %s1258_s15  ;;  %p45_p2 = scmp.eq.s32.totalorder %s1282_s21, 0 }
   0xc   : > { %s1750_s24 = smov (%p26_p0, %s25_s24), 0  ;;  %s1752_s25 = smov (!%p26_p0, %s28_s25), %s1278_s20 }
   0xd   : > { %s33_s27 = ssub.s32 %s1274_s19, %s1750_s24  ;;  %p1370_p3 = por %p45_p2, %p44_p1 }
   0xe   : > { %p30_p4 = scmp.ge.s32.totalorder %s1752_s25, 2  ;;  %s115_s29 = sadd.s32 1, %s1254_s14 }
   0xf   : > { %p125_p5 = scmp.ne.s32.totalorder %s1254_s14, %s1250_s13  ;;  %p126_p6 = scmp.eq.s32.totalorder %s930_s22, 3 }
  0x10   : > { %s1754_s25 = smov (%p30_p4, %s1752_s25), 0  ;;  %p131_p8 = scmp.ne.s32.totalorder %s1250_s13, %s1246_s12 }
  0x11   : > { %p1379_p7 = por %p126_p6, %p125_p5  ;;  %s32_s4 = ssub.s32 %s1278_s20, %s1754_s25 }
  0x12   : > { %p132_p9 = scmp.eq.s32.totalorder %s931_s23, 3  ;;  %s34_s5 = sor.u32 %s33_s27, %s32_s4 }
  0x13   : > { %p113_p10 = scmp.eq.s32.totalorder %s32_s4, 0  ;;  %p35_p11 = scmp.eq.s32.totalorder %s34_s5, 0 }
  0x14   : > { %p1387_p12 = por %p132_p9, %p131_p8  ;;  %p933_p13 = scmp.ge.s32.totalorder %s1282_s21, 4 }
  0x15   : > { %s1392_s7 = scalar_select %p113_p10, %s1254_s14, %s115_s29  }
  0x16   : > { %s1395_s8 = scalar_select %p35_p11, %s1262_s16, %s37_s26  }
  0x17   : > { %148 = sbr.rel (%p933_p13) target bundleno = 50 (0x32), region = 16 }
  0x1e   : > { %151 = sbr.rel (!%p1370_p3) target bundleno = 50 (0x32), region = 20  ;;  %s153_s9 = sand.u32 (%p1370_p3), 1, %s1262_s16  }
  0x1f   : > { %s969_s10 = sshll.u32 (%p1370_p3), %s1278_s20, 5  ;;  %s934_s11 = sshll.u32 (%p1370_p3), %s153_s9, 6 }
  0x20   : > { %s158_s22 = sadd.s32 (%p1370_p3), %s1274_s19, %s969_s10  ;;  %s1738_s0 = sld [smem:[#allocation6_spill]] (%p1370_p3) }
  0x21   : > { %s937_s23 = sshll.u32 (%p1370_p3), %s158_s22, 2  ;;  %s155_s26 = scalar_lea.vmem (%p1370_p3), [#allocation2], %s934_s11 }
  0x26   : > { %s1406_s29 = scalar_lea.vmem %s1738_s0, %s937_s23 }
  0x27   : > { %v176_v0 = vld [vmem:[%s1406_s29] sm:$0xf]  ;;  %v178_v1 = vld [vmem:[%s1406_s29 + $0x8] sm:$0xf]  ;;  %v180_v2 = vld [vmem:[%s1406_s29 + $0x10] sm:$0xf] }
  0x28   : > { %177 = vst [vmem:[%s155_s26] sm:$0xf] %v176_v0  ;;  %179 = vst [vmem:[%s155_s26 + $0x4] sm:$0xf] %v178_v1  ;;  %v182_v3 = vld [vmem:[%s1406_s29 + $0x18] sm:$0xf] }
  0x29   : > { %181 = vst [vmem:[%s155_s26 + $0x8] sm:$0xf] %v180_v2  ;;  %v184_v4 = vld [vmem:[%s1406_s29 + $0x20] sm:$0xf]  ;;  %v186_v5 = vld [vmem:[%s1406_s29 + $0x28] sm:$0xf] }
  0x2a   : > { %183 = vst [vmem:[%s155_s26 + $0xc] sm:$0xf] %v182_v3  ;;  %185 = vst [vmem:[%s155_s26 + $0x10] sm:$0xf] %v184_v4  ;;  %v188_v6 = vld [vmem:[%s1406_s29 + $0x30] sm:$0xf] }
  0x2b   : > { %187 = vst [vmem:[%s155_s26 + $0x14] sm:$0xf] %v186_v5  ;;  %v190_v7 = vld [vmem:[%s1406_s29 + $0x38] sm:$0xf]  ;;  %v192_v8 = vld [vmem:[%s1406_s29 + $0x40] sm:$0xf] }
  0x2c   : > { %189 = vst [vmem:[%s155_s26 + $0x18] sm:$0xf] %v188_v6  ;;  %191 = vst [vmem:[%s155_s26 + $0x1c] sm:$0xf] %v190_v7  ;;  %v194_v9 = vld [vmem:[%s1406_s29 + $0x48] sm:$0xf] }
  0x2d   : > { %193 = vst [vmem:[%s155_s26 + $0x20] sm:$0xf] %v192_v8  ;;  %v196_v10 = vld [vmem:[%s1406_s29 + $0x50] sm:$0xf]  ;;  %v198_v11 = vld [vmem:[%s1406_s29 + $0x58] sm:$0xf] }
  0x2e   : > { %195 = vst [vmem:[%s155_s26 + $0x24] sm:$0xf] %v194_v9  ;;  %197 = vst [vmem:[%s155_s26 + $0x28] sm:$0xf] %v196_v10  ;;  %v200_v12 = vld [vmem:[%s1406_s29 + $0x60] sm:$0xf] }
  0x2f   : > { %199 = vst [vmem:[%s155_s26 + $0x2c] sm:$0xf] %v198_v11  ;;  %v202_v13 = vld [vmem:[%s1406_s29 + $0x68] sm:$0xf]  ;;  %v204_v14 = vld [vmem:[%s1406_s29 + $0x70] sm:$0xf] }
  0x30   : > { %201 = vst [vmem:[%s155_s26 + $0x30] sm:$0xf] %v200_v12  ;;  %203 = vst [vmem:[%s155_s26 + $0x34] sm:$0xf] %v202_v13  ;;  %v206_v15 = vld [vmem:[%s1406_s29 + $0x78] sm:$0xf] }
  0x31   : > { %205 = vst [vmem:[%s155_s26 + $0x38] sm:$0xf] %v204_v14  ;;  %207 = vst [vmem:[%s155_s26 + $0x3c] sm:$0xf] %v206_v15 }
  0x32 PF: > { %p938_p0 = scmp.ge.s32.totalorder %s1282_s21, 1  ;;  %p279_p1 = scmp.lt.s32.totalorder %s1282_s21, 5 }
  0x34   : > { %p280_p2 = pnand %p938_p0, %p279_p1 }
  0x35   : > { %s1733_s28 = sand.u32 (!%p280_p2), 1, %s1250_s13   ;;  %s941_s5 = sshll.u32 (!%p280_p2), %s1266_s17, 4 }
  0x36   : > { %283 = sbr.rel (%p280_p2) target bundleno = 557 (0x22d), region = 69  ;;  %s1430_s9 = sshll.u32 (!%p280_p2), %s1733_s28, 7 }
  0x37   : > { %p321_p3 = scmp.lt.s32.totalorder (!%p280_p2), %s941_s5, 31  ;;  %s943_s10 = sshll.u32 (!%p280_p2), %s1270_s18, 4 }
  0x38   : > { %p327_p4 = scmp.lt.s32.totalorder (!%p280_p2), %s943_s10, 31  ;;  %s286_s4 = sand.u32 (!%p280_p2), 1, %s1258_s15  }
  0x39   : > { %s939_s26 = sshll.u32 (!%p280_p2), %s286_s4, 6  ;;  %s1471_s0 = scalar_lea.vmem (!%p280_p2), [#allocation3], %s1430_s9 }
  0x3a   : > { %s1448_s15 = scalar_lea.vmem (!%p280_p2), [#allocation2], %s939_s26  ;;  %p961_p5 = scmp.ne.s32.totalorder (!%p280_p2), %s1266_s17, 0 }
  0x3b   : > { %v1132_v20 = vld [vmem:[%s1448_s15] sm:$0xff] (!%p280_p2)   ;;  %v1134_v26 = vld [vmem:[%s1448_s15 + $0x8] sm:$0xff] (!%p280_p2)   ;;  %v1136_v28 = vld [vmem:[%s1448_s15 + $0x10] sm:$0xff] (!%p280_p2)  }
  0x3c   : > { %v1133_v21 = vld [vmem:[%s1448_s15 + $0x20] sm:$0xff] (!%p280_p2)   ;;  %1003 = vmatprep.mubr.bf16.mxu0 (!%p280_p2), %v1132_v20  ;;  %v1135_v27 = vld [vmem:[%s1448_s15 + $0x28] sm:$0xff] (!%p280_p2)   ;;  %v1137_v29 = vld [vmem:[%s1448_s15 + $0x30] sm:$0xff] (!%p280_p2)  }
  0x3d   : > { %s1756_s5 = smov (!%p321_p3, %s941_s5), 31  ;;  %s1758_s10 = smov (!%p327_p4, %s943_s10), 31  ;;  %1011 = vmatprep.mubr.bf16.mxu1 %v1133_v21  ;;  %v1138_v30 = vld [vmem:[%s1448_s15 + $0x18] sm:$0xff]  }
  0x3e   : > { %s942_s11 = sshll.u32 %s1756_s5, 2  ;;  %s944_s29 = sshll.u32 %s1758_s10, 3  ;;  %v1139_v31 = vld [vmem:[%s1448_s15 + $0x38] sm:$0xff]  }
  0x3f   : > { %s1436_s27 = scalar_lea.vmem %s1730_s1, %s942_s11  ;;  %s1444_s5 = scalar_lea.vmem %s1731_s2, %s944_s29 }
  0x40   : > { %v1124_v16 = vld [vmem:[%s1436_s27] sm:$0xff]   ;;  %v1125_v17 = vld [vmem:[%s1436_s27 + $0x8] sm:$0xff]   ;;  %v1126_v18 = vld [vmem:[%s1436_s27 + $0x10] sm:$0xff]  }
  0x41   : > { %987 = vmatprep.subr.bf16.mxu0 %v1124_v16  ;;  %1019 = vmatprep.subr.bf16.mxu1 %v1124_v16  ;;  %v1127_v19 = vld [vmem:[%s1436_s27 + $0x18] sm:$0xff]   ;;  %v1128_v22 = vld [vmem:[%s1436_s27 + $0x20] sm:$0xff]   ;;  %v1129_v23 = vld [vmem:[%s1436_s27 + $0x28] sm:$0xff]  }
  0x42   : > { %988 = vmatpush3.bf16.msra.mxu0 %v1124_v16  ;;  %1027 = vmatpush3.bf16.msra.mxu1 %v1124_v16  ;;  %v1130_v24 = vld [vmem:[%s1436_s27 + $0x30] sm:$0xff]   ;;  %v1131_v25 = vld [vmem:[%s1436_s27 + $0x38] sm:$0xff]  }
  0x43   : > { %989 = vmatprep.subr.bf16.mxu0 %v1125_v17  ;;  %1020 = vmatprep.subr.bf16.mxu1 %v1125_v17 }
  0x46   : > { %990 = vmatpush3.bf16.msra.mxu0 %v1125_v17  ;;  %1028 = vmatpush3.bf16.msra.mxu1 %v1125_v17 }
  0x47   : > { %991 = vmatprep.subr.bf16.mxu0 %v1126_v18  ;;  %1021 = vmatprep.subr.bf16.mxu1 %v1126_v18 }
  0x4a   : > { %992 = vmatpush3.bf16.msra.mxu0 %v1126_v18  ;;  %1029 = vmatpush3.bf16.msra.mxu1 %v1126_v18 }
  0x4b   : > { %993 = vmatprep.subr.bf16.mxu0 %v1127_v19  ;;  %1022 = vmatprep.subr.bf16.mxu1 %v1127_v19 }
  0x4e   : > { %994 = vmatpush3.bf16.msra.mxu0 %v1127_v19  ;;  %1030 = vmatpush3.bf16.msra.mxu1 %v1127_v19 }
  0x4f   : > { %995 = vmatprep.subr.bf16.mxu0 %v1128_v22  ;;  %1023 = vmatprep.subr.bf16.mxu1 %v1128_v22 }
  0x52   : > { %996 = vmatpush3.bf16.msra.mxu0 %v1128_v22  ;;  %1031 = vmatpush3.bf16.msra.mxu1 %v1128_v22 }
  0x53   : > { %997 = vmatprep.subr.bf16.mxu0 %v1129_v23  ;;  %1024 = vmatprep.subr.bf16.mxu1 %v1129_v23 }
  0x56   : > { %998 = vmatpush3.bf16.msra.mxu0 %v1129_v23  ;;  %1032 = vmatpush3.bf16.msra.mxu1 %v1129_v23 }
  0x57   : > { %999 = vmatprep.subr.bf16.mxu0 %v1130_v24  ;;  %1025 = vmatprep.subr.bf16.mxu1 %v1130_v24 }
  0x5a   : > { %1000 = vmatpush3.bf16.msra.mxu0 %v1130_v24  ;;  %1033 = vmatpush3.bf16.msra.mxu1 %v1130_v24 }
  0x5b   : > { %1001 = vmatprep.subr.bf16.mxu0 %v1131_v25  ;;  %1026 = vmatprep.subr.bf16.mxu1 %v1131_v25 }
  0x5e   : > { %1002 = vmatpush3.bf16.msra.mxu0 %v1131_v25  ;;  %1034 = vmatpush3.bf16.msra.mxu1 %v1131_v25 }
  0x61   : > { %1004 = vmatmul.mubr.bf16.vlgmr.msra.gmra.mrb[0].mxu0 %v1134_v26  ;;  %1012 = vmatmul.mubr.bf16.vlgmr.msra.gmra.mrb[0].mxu1 %v1135_v27 }
  0x62   : > { %1007 = vmatprep.mubr.bf16.mxu0 %v1136_v28  ;;  %1015 = vmatprep.mubr.bf16.mxu1 %v1137_v29 }
  0x69   : > { %1008 = vmatmul.mubr.bf16.gmra.mrb[4].mxu0 %v1138_v30  ;;  %1016 = vmatmul.mubr.bf16.gmra.mrb[4].mxu1 %v1139_v31 }
 0x134   : > { %v1005_v32 = vpop.f32.mrb[0].mxu0  ;;  %v1462_v33 = vpop.f32.mrb[0].mxu1 }
 0x135   : > { %v496_v34 = vpop.f32.mrb[1].mxu0  ;;  %v528_v35 = vpop.f32.mrb[1].mxu1  ;;  %565 = vst [vmem:[%s1471_s0 + $0x10] sm:$0xff] (!%p961_p5), %v1005_v32  ;;  %573 = vst [vmem:[%s1471_s0 + $0x50] sm:$0xff] (!%p961_p5), %v1462_v33 }
 0x136   : > { %v1006_v36 = vpop.f32.mrb[2].mxu0  ;;  %v1014_v37 = vpop.f32.mrb[2].mxu1  ;;  %563 = vst [vmem:[%s1471_s0] sm:$0xff] (!%p961_p5), %v496_v34  ;;  %571 = vst [vmem:[%s1471_s0 + $0x40] sm:$0xff] (!%p961_p5), %v528_v35 }
 0x137   : > { %v499_v38 = vpop.f32.mrb[3].mxu0  ;;  %v531_v39 = vpop.f32.mrb[3].mxu1  ;;  %566 = vst [vmem:[%s1471_s0 + $0x18] sm:$0xff] (!%p961_p5), %v1006_v36  ;;  %574 = vst [vmem:[%s1471_s0 + $0x58] sm:$0xff] (!%p961_p5), %v1014_v37 }
 0x138   : > { %564 = vst [vmem:[%s1471_s0 + $0x8] sm:$0xff] (!%p961_p5), %v499_v38  ;;  %572 = vst [vmem:[%s1471_s0 + $0x48] sm:$0xff] (!%p961_p5), %v531_v39 }
 0x139   : > { %562 = sbr.rel (%p961_p5) target bundleno = 321 (0x141), region = 77 }
 0x13c   : > { %v1009_v40 = vpop.f32.mrb[4].mxu0  ;;  %v1464_v41 = vpop.f32.mrb[4].mxu1 }
 0x13d   : > { %v512_v42 = vpop.f32.mrb[5].mxu0  ;;  %v1466_v43 = vpop.f32.mrb[5].mxu1  ;;  %569 = vst [vmem:[%s1471_s0 + $0x30] sm:$0xff] (!%p961_p5), %v1009_v40  ;;  %577 = vst [vmem:[%s1471_s0 + $0x70] sm:$0xff] (!%p961_p5), %v1464_v41 }
 0x13e   : > { %v1010_v44 = vpop.f32.mrb[6].mxu0  ;;  %v1468_v45 = vpop.f32.mrb[6].mxu1  ;;  %567 = vst [vmem:[%s1471_s0 + $0x20] sm:$0xff] (!%p961_p5), %v512_v42  ;;  %575 = vst [vmem:[%s1471_s0 + $0x60] sm:$0xff] (!%p961_p5), %v1466_v43 }
 0x13f   : > { %v515_v46 = vpop.f32.mrb[7].mxu0  ;;  %v547_v47 = vpop.f32.mrb[7].mxu1  ;;  %570 = vst [vmem:[%s1471_s0 + $0x38] sm:$0xff] (!%p961_p5), %v1010_v44  ;;  %578 = vst [vmem:[%s1471_s0 + $0x78] sm:$0xff] (!%p961_p5), %v1468_v45 }
 0x140   : > { %568 = vst [vmem:[%s1471_s0 + $0x28] sm:$0xff] %v515_v46  ;;  %576 = vst [vmem:[%s1471_s0 + $0x68] sm:$0xff] %v547_v47 }
 0x141 PF: > { %p962_p6 = scmp.le.s32.totalorder %s1266_s17, 0 }
 0x142   : > { %v583_v48 = vld [vmem:[%s1471_s0] sm:$0xff] (!%p962_p6)  ;;  %v584_v49 = vld [vmem:[%s1471_s0 + $0x8] sm:$0xff] (!%p962_p6)  ;;  %v585_v50 = vld [vmem:[%s1471_s0 + $0x10] sm:$0xff] (!%p962_p6) }
 0x143   : > { %582 = sbr.rel (%p962_p6) target bundleno = 334 (0x14e), region = 81  ;;  %v599_v51 = vadd.f32 (!%p962_p6), %v583_v48, %v496_v34  ;;  %v600_v52 = vadd.f32 (!%p962_p6), %v584_v49, %v499_v38  ;;  %v601_v53 = vadd.f32 (!%p962_p6), %v1005_v32, %v585_v50  ;;  %v586_v54 = vld [vmem:[%s1471_s0 + $0x18] sm:$0xff] (!%p962_p6)  ;;  %v591_v62 = vld [vmem:[%s1471_s0 + $0x40] sm:$0xff] (!%p962_p6)  ;;  %v592_v2 = vld [vmem:[%s1471_s0 + $0x48] sm:$0xff] (!%p962_p6) }
 0x144   : > { %v602_v57 = vadd.f32 (!%p962_p6), %v1006_v36, %v586_v54  ;;  %v607_v1 = vadd.f32 (!%p962_p6), %v591_v62, %v528_v35  ;;  %v593_v3 = vld [vmem:[%s1471_s0 + $0x50] sm:$0xff] (!%p962_p6)  ;;  %v594_v4 = vld [vmem:[%s1471_s0 + $0x58] sm:$0xff] (!%p962_p6)  ;;  %v608_v5 = vadd.f32 (!%p962_p6), %v592_v2, %v531_v39 }
 0x145   : > { %v589_v60 = vld [vmem:[%s1471_s0 + $0x30] sm:$0xff] (!%p962_p6)  ;;  %615 = vst [vmem:[%s1471_s0] sm:$0xff] (!%p962_p6), %v599_v51  ;;  %616 = vst [vmem:[%s1471_s0 + $0x8] sm:$0xff] (!%p962_p6), %v600_v52  ;;  %v609_v6 = vadd.f32 (!%p962_p6), %v1462_v33, %v593_v3  ;;  %v610_v7 = vadd.f32 (!%p962_p6), %v1014_v37, %v594_v4 }
 0x146   : > { %v587_v55 = vld [vmem:[%s1471_s0 + $0x20] sm:$0xff] (!%p962_p6)  ;;  %617 = vst [vmem:[%s1471_s0 + $0x10] sm:$0xff] (!%p962_p6), %v601_v53  ;;  %v605_v63 = vadd.f32 (!%p962_p6), %v1009_v40, %v589_v60  ;;  %618 = vst [vmem:[%s1471_s0 + $0x18] sm:$0xff] (!%p962_p6), %v602_v57  ;;  %v597_v10 = vld [vmem:[%s1471_s0 + $0x70] sm:$0xff] (!%p962_p6) }
 0x147   : > { %v588_v56 = vld [vmem:[%s1471_s0 + $0x28] sm:$0xff] (!%p962_p6)  ;;  %v603_v58 = vadd.f32 (!%p962_p6), %v587_v55, %v512_v42  ;;  %v590_v61 = vld [vmem:[%s1471_s0 + $0x38] sm:$0xff] (!%p962_p6)  ;;  %v595_v8 = vld [vmem:[%s1471_s0 + $0x60] sm:$0xff] (!%p962_p6)  ;;  %623 = vst [vmem:[%s1471_s0 + $0x40] sm:$0xff] (!%p962_p6), %v607_v1  ;;  %v613_v13 = vadd.f32 (!%p962_p6), %v1464_v41, %v597_v10 }
 0x148   : > { %v604_v59 = vadd.f32 (!%p962_p6), %v588_v56, %v515_v46  ;;  %v606_v0 = vadd.f32 (!%p962_p6), %v1010_v44, %v590_v61  ;;  %v596_v9 = vld [vmem:[%s1471_s0 + $0x68] sm:$0xff] (!%p962_p6)  ;;  %621 = vst [vmem:[%s1471_s0 + $0x30] sm:$0xff] (!%p962_p6), %v605_v63  ;;  %v611_v11 = vadd.f32 (!%p962_p6), %v595_v8, %v1466_v43  ;;  %v598_v14 = vld [vmem:[%s1471_s0 + $0x78] sm:$0xff] (!%p962_p6)  ;;  %624 = vst [vmem:[%s1471_s0 + $0x48] sm:$0xff] (!%p962_p6), %v608_v5 }
 0x149   : > { %619 = vst [vmem:[%s1471_s0 + $0x20] sm:$0xff] (!%p962_p6), %v603_v58  ;;  %v612_v12 = vadd.f32 (!%p962_p6), %v596_v9, %v547_v47  ;;  %625 = vst [vmem:[%s1471_s0 + $0x50] sm:$0xff] (!%p962_p6), %v609_v6  ;;  %v614_v15 = vadd.f32 (!%p962_p6), %v1468_v45, %v598_v14 }
 0x14a   : > { %620 = vst [vmem:[%s1471_s0 + $0x28] sm:$0xff] %v604_v59  ;;  %622 = vst [vmem:[%s1471_s0 + $0x38] sm:$0xff] %v606_v0 }
 0x14b   : > { %626 = vst [vmem:[%s1471_s0 + $0x58] sm:$0xff] %v610_v7  ;;  %627 = vst [vmem:[%s1471_s0 + $0x60] sm:$0xff] %v611_v11 }
 0x14c   : > { %628 = vst [vmem:[%s1471_s0 + $0x68] sm:$0xff] %v612_v12  ;;  %629 = vst [vmem:[%s1471_s0 + $0x70] sm:$0xff] %v613_v13 }
 0x14d   : > { %630 = vst [vmem:[%s1471_s0 + $0x78] sm:$0xff] %v614_v15 }
 0x14e PF: > { %p963_p8 = scmp.ne.s32.totalorder %s1266_s17, 1 }
 0x14f   : > { %v637_v16 = vld [vmem:[%s1444_s5 + $0x10] sm:$0xff] (!%p963_p8)  ;;  %v635_v18 = vld [vmem:[%s1444_s5] sm:$0xff] (!%p963_p8)  ;;  %v638_v21 = vld [vmem:[%s1444_s5 + $0x18] sm:$0xff] (!%p963_p8) }
 0x150   : > { %634 = sbr.rel (%p963_p8) target bundleno = 531 (0x213), region = 85  ;;  %v651_v20 = vld [vmem:[%s1471_s0] sm:$0xff] (!%p963_p8)  ;;  %v636_v25 = vld [vmem:[%s1444_s5 + $0x8] sm:$0xff] (!%p963_p8)  ;;  %v642_v47 = vld [vmem:[%s1444_s5 + $0x38] sm:$0xff] (!%p963_p8) }
 0x151   : > { %v653_v17 = vld [vmem:[%s1471_s0 + $0x10] sm:$0xff] (!%p963_p8)  ;;  %v654_v22 = vld [vmem:[%s1471_s0 + $0x18] sm:$0xff] (!%p963_p8)  ;;  %v667_v23 = vmax.f32 (!%p963_p8), %v651_v20, 0.0  ;;  %v652_v26 = vld [vmem:[%s1471_s0 + $0x8] sm:$0xff] (!%p963_p8) }
 0x152   : > { %v669_v19 = vmax.f32 (!%p963_p8), %v653_v17, 0.0  ;;  %v670_v24 = vmax.f32 (!%p963_p8), %v654_v22, 0.0  ;;  %v668_v28 = vmax.f32 (!%p963_p8), %v652_v26, 0.0  ;;  %v640_v33 = vld [vmem:[%s1444_s5 + $0x28] sm:$0xff] (!%p963_p8)  ;;  %v639_v39 = vld [vmem:[%s1444_s5 + $0x20] sm:$0xff] (!%p963_p8)  ;;  %v641_v50 = vld [vmem:[%s1444_s5 + $0x30] sm:$0xff] (!%p963_p8) }
 0x153   : > { %v1544_v31 = vadd.f32 (!%p963_p8), %v667_v23, %v635_v18  ;;  %v657_v40 = vld [vmem:[%s1471_s0 + $0x30] sm:$0xff] (!%p963_p8)  ;;  %v660_v49 = vld [vmem:[%s1471_s0 + $0x48] sm:$0xff] (!%p963_p8)  ;;  %v659_v51 = vld [vmem:[%s1471_s0 + $0x40] sm:$0xff] (!%p963_p8) }
 0x154   : > { %v1540_v27 = vadd.f32 (!%p963_p8), %v669_v19, %v637_v16  ;;  %v655_v30 = vld [vmem:[%s1471_s0 + $0x20] sm:$0xff] (!%p963_p8)  ;;  %v1546_v32 = vadd.f32 (!%p963_p8), %v670_v24, %v638_v21  ;;  %v1552_v38 = vadd.f32 (!%p963_p8), %v668_v28, %v636_v25  ;;  %v673_v48 = vmax.f32 (!%p963_p8), %v657_v40, 0.0  ;;  %v644_v57 = vld [vmem:[%s1444_s5 + $0x48] sm:$0xff] (!%p963_p8)  ;;  %v662_v59 = vld [vmem:[%s1471_s0 + $0x58] sm:$0xff] (!%p963_p8) }
 0x155   : > { %v656_v29 = vld [vmem:[%s1471_s0 + $0x28] sm:$0xff] (!%p963_p8)  ;;  %v671_v35 = vmax.f32 (!%p963_p8), %v655_v30, 0.0  ;;  %v658_v36 = vld [vmem:[%s1471_s0 + $0x38] sm:$0xff] (!%p963_p8)  ;;  %v699_v41 = vmul.f32 (!%p963_p8), %v1544_v31, %v1544_v31  ;;  %v676_v54 = vmax.f32 (!%p963_p8), %v660_v49, 0.0  ;;  %v675_v58 = vmax.f32 (!%p963_p8), %v659_v51, 0.0  ;;  %v643_v60 = vld [vmem:[%s1444_s5 + $0x40] sm:$0xff] (!%p963_p8) }
 0x156   : > { %v672_v34 = vmax.f32 (!%p963_p8), %v656_v29, 0.0  ;;  %v701_v37 = vmul.f32 (!%p963_p8), %v1540_v27, %v1540_v27  ;;  %v702_v42 = vmul.f32 (!%p963_p8), %v1546_v32, %v1546_v32  ;;  %v674_v44 = vmax.f32 (!%p963_p8), %v658_v36, 0.0  ;;  %v661_v61 = vld [vmem:[%s1471_s0 + $0x50] sm:$0xff] (!%p963_p8)  ;;  %v646_v3 = vld [vmem:[%s1444_s5 + $0x58] sm:$0xff] (!%p963_p8)  ;;  %v664_v5 = vld [vmem:[%s1471_s0 + $0x68] sm:$0xff] (!%p963_p8) }
 0x157   : > { %715 = vadd.xlane.f32.xlu0 %v699_v41  ;;  %v700_v45 = vmul.f32 %v1552_v38, %v1552_v38  ;;  %v1564_v46 = vadd.f32 %v671_v35, %v639_v39  ;;  %v1576_v56 = vadd.f32 %v673_v48, %v641_v50  ;;  %v1584_v63 = vadd.f32 %v676_v54, %v644_v57  ;;  %v645_v6 = vld [vmem:[%s1444_s5 + $0x50] sm:$0xff]  ;;  %v663_v7 = vld [vmem:[%s1471_s0 + $0x60] sm:$0xff]  ;;  %v648_v13 = vld [vmem:[%s1444_s5 + $0x68] sm:$0xff] }
 0x158   : > { %719 = vadd.xlane.f32.xlu1 %v701_v37  ;;  %v1560_v43 = vadd.f32 %v672_v34, %v640_v33  ;;  %v1572_v53 = vadd.f32 %v674_v44, %v642_v47  ;;  %v678_v0 = vmax.f32 %v662_v59, 0.0  ;;  %v1588_v2 = vadd.f32 %v675_v58, %v643_v60  ;;  %v666_v15 = vld [vmem:[%s1471_s0 + $0x78] sm:$0xff]  ;;  %v647_v16 = vld [vmem:[%s1444_s5 + $0x60] sm:$0xff]  ;;  %v665_v17 = vld [vmem:[%s1471_s0 + $0x70] sm:$0xff] }
 0x159   : > { %v703_v55 = vmul.f32 %v1564_v46, %v1564_v46  ;;  %v705_v1 = vmul.f32 %v1576_v56, %v1576_v56  ;;  %v677_v4 = vmax.f32 %v661_v61, 0.0  ;;  %v708_v8 = vmul.f32 %v1584_v63, %v1584_v63  ;;  %v650_v23 = vld [vmem:[%s1444_s5 + $0x78] sm:$0xff]  ;;  %v649_v25 = vld [vmem:[%s1444_s5 + $0x70] sm:$0xff] }
 0x15a   : > { %v704_v52 = vmul.f32 %v1560_v43, %v1560_v43  ;;  %v706_v62 = vmul.f32 %v1572_v53, %v1572_v53  ;;  %v1596_v9 = vadd.f32 %v678_v0, %v646_v3  ;;  %v680_v10 = vmax.f32 %v664_v5, 0.0 }
 0x15b   : > { %717 = vadd.xlane.f32.xlu0 %v700_v45  ;;  %v707_v11 = vmul.f32 %v1588_v2, %v1588_v2  ;;  %v1600_v12 = vadd.f32 %v677_v4, %v645_v6  ;;  %v679_v14 = vmax.f32 %v663_v7, 0.0  ;;  %v682_v20 = vmax.f32 %v666_v15, 0.0 }
 0x15c   : > { %721 = vadd.xlane.f32.xlu1 %v702_v42  ;;  %v710_v18 = vmul.f32 %v1596_v9, %v1596_v9  ;;  %v1608_v19 = vadd.f32 %v680_v10, %v648_v13  ;;  %v681_v24 = vmax.f32 %v665_v17, 0.0 }
 0x15d   : > { %v709_v21 = vmul.f32 %v1600_v12, %v1600_v12  ;;  %v1612_v22 = vadd.f32 %v679_v14, %v647_v16  ;;  %v1618_v28 = vadd.f32 %v682_v20, %v650_v23 }
 0x15e   : > { %v712_v26 = vmul.f32 %v1608_v19, %v1608_v19  ;;  %v1622_v30 = vadd.f32 %v681_v24, %v649_v25 }
 0x15f   : > { %723 = vadd.xlane.f32.xlu0 %v703_v55  ;;  %v711_v29 = vmul.f32 %v1612_v22, %v1612_v22  ;;  %v714_v33 = vmul.f32 %v1618_v28, %v1618_v28 }
 0x160   : > { %725 = vadd.xlane.f32.xlu1 %v704_v52  ;;  %v713_v34 = vmul.f32 %v1622_v30, %v1622_v30 }
 0x163   : > { %727 = vadd.xlane.f32.xlu0 %v705_v1 }
 0x164   : > { %729 = vadd.xlane.f32.xlu1 %v706_v62 }
 0x167   : > { %731 = vadd.xlane.f32.xlu0 %v707_v11 }
 0x168   : > { %733 = vadd.xlane.f32.xlu1 %v708_v8 }
 0x16b   : > { %735 = vadd.xlane.f32.xlu0 %v709_v21 }
 0x16c   : > { %737 = vadd.xlane.f32.xlu1 %v710_v18 }
 0x16f   : > { %739 = vadd.xlane.f32.xlu0 %v711_v29 }
 0x170   : > { %741 = vadd.xlane.f32.xlu1 %v712_v26 }
 0x173   : > { %743 = vadd.xlane.f32.xlu0 %v713_v34 }
 0x174   : > { %745 = vadd.xlane.f32.xlu1 %v714_v33 }
 0x1e4   : > { %v716_v37 = vpop.xlane.xlu0 %715 }
 0x1e5   : > { %v720_v35 = vpop.xlane.xlu1 %719  ;;  %v747_v39 = vmax.f32 %v716_v37, 1e-24 }
 0x1e6   : > { %v749_v36 = vmax.f32 %v720_v35, 1e-24 }
 0x1e8   : > { %1140 = vrsqrt.f32 %v749_v36  ;;  %v718_v42 = vpop.xlane.xlu0 %717 }
 0x1e9   : > { %1142 = vrsqrt.f32 %v747_v39  ;;  %v722_v40 = vpop.xlane.xlu1 %721  ;;  %v748_v44 = vmax.f32 %v718_v42, 1e-24 }
 0x1ea   : > { %v750_v41 = vmax.f32 %v722_v40, 1e-24 }
 0x1ec   : > { %1144 = vrsqrt.f32 %v750_v41  ;;  %v724_v48 = vpop.xlane.xlu0 %723 }
 0x1ed   : > { %1146 = vrsqrt.f32 %v748_v44  ;;  %v726_v45 = vpop.xlane.xlu1 %725  ;;  %v751_v49 = vmax.f32 %v724_v48, 1e-24 }
 0x1ee   : > { %v752_v47 = vmax.f32 %v726_v45, 1e-24 }
 0x1f0   : > { %1148 = vrsqrt.f32 %v752_v47  ;;  %v728_v54 = vpop.xlane.xlu0 %727 }
 0x1f1   : > { %1150 = vrsqrt.f32 %v751_v49  ;;  %v730_v50 = vpop.xlane.xlu1 %729  ;;  %v753_v58 = vmax.f32 %v728_v54, 1e-24 }
 0x1f2   : > { %v1141_v51 = vpop.eup %1140  ;;  %v754_v52 = vmax.f32 %v730_v50, 1e-24 }
 0x1f3   : > { %v1143_v55 = vpop.eup %1142  ;;  %v781_v57 = vmul.f32 %v1141_v51, %v1540_v27 }
 0x1f4   : > { %v779_v59 = vmul.f32 %v1143_v55, %v1544_v31  ;;  %1152 = vrsqrt.f32 %v754_v52  ;;  %v732_v0 = vpop.xlane.xlu0 %731 }
 0x1f5   : > { %797 = vst [vmem:[%s1471_s0 + $0x10] sm:$0xff] %v781_v57  ;;  %1154 = vrsqrt.f32 %v753_v58  ;;  %v734_v60 = vpop.xlane.xlu1 %733  ;;  %v755_v4 = vmax.f32 %v732_v0, 1e-24 }
 0x1f6   : > { %v1145_v61 = vpop.eup %1144  ;;  %795 = vst [vmem:[%s1471_s0] sm:$0xff] %v779_v59  ;;  %v756_v62 = vmax.f32 %v734_v60, 1e-24 }
 0x1f7   : > { %v1147_v1 = vpop.eup %1146  ;;  %v782_v3 = vmul.f32 %v1145_v61, %v1546_v32 }
 0x1f8   : > { %v780_v27 = vmul.f32 %v1147_v1, %v1552_v38  ;;  %1156 = vrsqrt.f32 %v756_v62  ;;  %v736_v7 = vpop.xlane.xlu0 %735 }
 0x1f9   : > { %798 = vst [vmem:[%s1471_s0 + $0x18] sm:$0xff] %v782_v3  ;;  %1158 = vrsqrt.f32 %v755_v4  ;;  %v738_v31 = vpop.xlane.xlu1 %737  ;;  %v757_v11 = vmax.f32 %v736_v7, 1e-24 }
 0x1fa   : > { %v1149_v5 = vpop.eup %1148  ;;  %796 = vst [vmem:[%s1471_s0 + $0x8] sm:$0xff] %v780_v27  ;;  %v758_v6 = vmax.f32 %v738_v31, 1e-24 }
 0x1fb   : > { %v1151_v8 = vpop.eup %1150  ;;  %v784_v10 = vmul.f32 %v1149_v5, %v1560_v43 }
 0x1fc   : > { %v783_v32 = vmul.f32 %v1151_v8, %v1564_v46  ;;  %1160 = vrsqrt.f32 %v758_v6  ;;  %v740_v15 = vpop.xlane.xlu0 %739 }
 0x1fd   : > { %800 = vst [vmem:[%s1471_s0 + $0x28] sm:$0xff] %v784_v10  ;;  %1162 = vrsqrt.f32 %v757_v11  ;;  %v742_v38 = vpop.xlane.xlu1 %741  ;;  %v759_v18 = vmax.f32 %v740_v15, 1e-24 }
 0x1fe   : > { %v1153_v13 = vpop.eup %1152  ;;  %799 = vst [vmem:[%s1471_s0 + $0x20] sm:$0xff] %v783_v32  ;;  %v760_v14 = vmax.f32 %v742_v38, 1e-24 }
 0x1ff   : > { %v1155_v16 = vpop.eup %1154  ;;  %v786_v17 = vmul.f32 %v1153_v13, %v1572_v53 }
 0x200   : > { %v785_v43 = vmul.f32 %v1155_v16, %v1576_v56  ;;  %1164 = vrsqrt.f32 %v760_v14  ;;  %v744_v23 = vpop.xlane.xlu0 %743 }
 0x201   : > { %802 = vst [vmem:[%s1471_s0 + $0x38] sm:$0xff] %v786_v17  ;;  %1166 = vrsqrt.f32 %v759_v18  ;;  %v746_v46 = vpop.xlane.xlu1 %745  ;;  %v761_v26 = vmax.f32 %v744_v23, 1e-24 }
 0x202   : > { %v1157_v20 = vpop.eup %1156  ;;  %801 = vst [vmem:[%s1471_s0 + $0x30] sm:$0xff] %v785_v43  ;;  %v762_v21 = vmax.f32 %v746_v46, 1e-24 }
 0x203   : > { %v1159_v24 = vpop.eup %1158  ;;  %v788_v25 = vmul.f32 %v1157_v20, %v1584_v63 }
 0x204   : > { %v787_v53 = vmul.f32 %v1159_v24, %v1588_v2  ;;  %1168 = vrsqrt.f32 %v762_v21 }
 0x205   : > { %804 = vst [vmem:[%s1471_s0 + $0x48] sm:$0xff] %v788_v25  ;;  %1170 = vrsqrt.f32 %v761_v26 }
 0x206   : > { %v1161_v56 = vpop.eup %1160  ;;  %803 = vst [vmem:[%s1471_s0 + $0x40] sm:$0xff] %v787_v53 }
 0x207   : > { %v1163_v29 = vpop.eup %1162  ;;  %v790_v33 = vmul.f32 %v1161_v56, %v1596_v9 }
 0x208   : > { %v789_v34 = vmul.f32 %v1163_v29, %v1600_v12 }
 0x209   : > { %806 = vst [vmem:[%s1471_s0 + $0x58] sm:$0xff] %v790_v33 }
 0x20a   : > { %v1165_v35 = vpop.eup %1164  ;;  %805 = vst [vmem:[%s1471_s0 + $0x50] sm:$0xff] %v789_v34 }
 0x20b   : > { %v1167_v63 = vpop.eup %1166  ;;  %v792_v36 = vmul.f32 %v1165_v35, %v1608_v19 }
 0x20c   : > { %v791_v2 = vmul.f32 %v1167_v63, %v1612_v22 }
 0x20d   : > { %808 = vst [vmem:[%s1471_s0 + $0x68] sm:$0xff] %v792_v36 }
 0x20e   : > { %v1169_v37 = vpop.eup %1168  ;;  %807 = vst [vmem:[%s1471_s0 + $0x60] sm:$0xff] %v791_v2 }
 0x20f   : > { %v1171_v39 = vpop.eup %1170  ;;  %v794_v40 = vmul.f32 %v1169_v37, %v1618_v28 }
 0x210   : > { %v793_v41 = vmul.f32 %v1171_v39, %v1622_v30 }
 0x211   : > { %810 = vst [vmem:[%s1471_s0 + $0x78] sm:$0xff] %v794_v40 }
 0x212   : > { %809 = vst [vmem:[%s1471_s0 + $0x70] sm:$0xff] %v793_v41 }
 0x213 PF: > { %s970_s17 = sshll.u32 %s1270_s18, 11  ;;  %s825_s11 = sshll.u32 %s1471_s0, 4  ;;  %s1667_s11 = int_to_ptr.vmem [resolvable:$true] %s825_s11 }
 0x214   : > { %s1664_s10 = scalar_lea.hbm %s1732_s3, %s970_s17  ;;  %s1739_s22 = sand.u32 1, %s1250_s13  }
 0x215   : > { %s1671_s23 = scalar_lea.sflag [#allocation4], %s1739_s22  ;;  %s1172_s27 = scalar_lea.vmem %s1667_s11, 2048 }
 0x216   : > { %p1173_p9 = scmp.ne.s32.totalorder %s1667_s11, %s1172_s27  ;;  %s1284_s18 = smov [#allocation3]  }
 0x217   : > { %s1176_s4 = sshll.u32 %s1284_s18, 4  ;;  %s1177_s4 = int_to_ptr.vmem [resolvable:$false] %s1176_s4 }
 0x218   : > { %p1174_p10 = pnand %p1173_p9, %p1379_p7  ;;  %s1178_s29 = scalar_lea.vmem %s1177_s4, 4096 }
 0x219   : > { %p1179_p13 = scmp.lt.s32.totalorder %s1667_s11, %s1177_s4  ;;  %p1180_p0 = scmp.lt.s32.totalorder %s1178_s29, %s1172_s27 }
 0x21a   : > { %p1175_p11 = pneg %p1174_p10 }
 0x21b   : > { %p1181_p1 = por %p1180_p0, %p1179_p13 }
 0x21d   : > { %p1182_p2 = pnand %p1181_p1, %p1175_p11 }
 0x21f   : > { %1185 = shalt.err (!%p1182_p2)
}
 0x220   : > { %s1186_s26 = scalar_lea.hbm %s1664_s10, 2048  ;;  %s1190_s0 = scalar_lea.hbm %s1732_s3, 4096 }
 0x221   : > { %p1187_p3 = scmp.ne.s32.totalorder %s1664_s10, %s1186_s26  ;;  %p1191_p6 = scmp.lt.u32.totalorder %s1664_s10, %s1732_s3 }
 0x222   : > { %p1192_p8 = scmp.lt.u32.totalorder %s1190_s0, %s1186_s26  ;;  %p1194_p10 = scmp.lt.u32.totalorder %s1186_s26, %s1664_s10 }
 0x223   : > { %p1188_p4 = pnand %p1187_p3, %p1379_p7 }
 0x224   : > { %p1193_p9 = por %p1192_p8, %p1191_p6 }
 0x225   : > { %p1189_p5 = pneg %p1188_p4 }
 0x226   : > { %p1195_p11 = por %p1194_p10, %p1193_p9 }
 0x228   : > { %p1196_p13 = pnand %p1195_p11, %p1189_p5 }
 0x22a   : > { %1199 = shalt.err (!%p1196_p13)
}
 0x22b   : > { %s1285_s9 = smov 128   ;;  %s1286_s22 = smov 8  }
 0x22c   : > { %1035 = dma.vmem_to_hbm [thread:$0]  (%p1379_p7), %s1667_s11, 2048, %s1664_s10, %s1671_s23, %s1285_s9, %s1285_s9, %s1286_s22  }
 0x22d PF: > { %p1041_p0 = scmp.ge.s32.totalorder %s1282_s21, 2  ;;  %s840_s27 = sand.u32 1, %s1246_s12  }
 0x22e   : > { %s841_s18 = scalar_lea.sflag [#allocation4], %s840_s27 }
 0x22f   : > { %p1038_p1 = pnand %p1041_p0, %p1387_p12 }
 0x231   : > { %1241 = dma.done.wait (!%p1038_p1), %s841_s18, 2048  }
 0x232   : > { %1243 = vsyncadd (!%p1038_p1), %s841_s18, 4294965248  ;;  %s16_s21 = sadd.s32 1, %s1282_s21   ;;  %s1740_s12 = smov %s1250_s13 }
 0x233   : > { %p13_p2 = scmp.ge.s32.totalorder %s16_s21, 6   ;;  %s1741_s13 = smov %s1254_s14 }
 0x234   : > { %s1742_s14 = smov %s1392_s7  ;;  %s1743_s15 = smov %s1262_s16 }
 0x235   : > { %s1744_s16 = smov %s1395_s8  ;;  %s1745_s17 = smov %s1274_s19 }
 0x236   : > { %s1746_s18 = smov %s1278_s20  ;;  %s1747_s19 = smov %s1750_s24 }
 0x237   : > { %s1748_s20 = smov %s1754_s25  ;;  %15 = sbr.rel (!%p13_p2) target bundleno = 8 (0x8), region = 131 }
 0x23e   :  { %846 = vsyncpa [#allocation4], 1 }
 0x23f   :  { %848 = vsyncpa [#allocation4 + $0x1], 1 }

// kernel: alpha_k_gnn_stage.4
= control target key start
LH: loop header
LB: loop body
LE: loop exit
PB: predicated region body
PF: predicated region fallthrough
CT: control target
= control target key end

     0   :  { %s710_s12 = smov 0   ;;  %s786_s0 = inlined_call_operand.vmem [shape: f32[256,128], index: 0, kind: input, shape index: {}]   ;;  %s787_s1 = inlined_call_operand.vmem [shape: bf16[128,128], index: 1, kind: input, shape index: {}]   ;;  %s788_s2 = inlined_call_operand.vmem [shape: f32[1,128], index: 2, kind: input, shape index: {}]   ;;  %s789_s3 = inlined_call_operand.vmem [shape: bf16[256,128], index: 3, kind: output, shape index: {}]  }
   0x1 LB: > { %s503_s13 = sadd.s32 4294967295, %s688_s12   ;;  %p507_p0 = scmp.ge.s32.totalorder %s688_s12, 1  ;;  %s688_s12 = sphi %s710_s12, %s13_s12  }
   0x2   : > { %p138_p1 = scmp.lt.s32.totalorder %s688_s12, 3 }
   0x4   : > { %p139_p2 = pnand %p507_p0, %p138_p1 }
   0x5   : > { %v674_v0 = vld [vmem:[%s787_s1] sm:$0xff] (!%p139_p2)   ;;  %s508_s16 = sshll.u32 (!%p139_p2), %s503_s13, 4  ;;  %v675_v1 = vld [vmem:[%s787_s1 + $0x8] sm:$0xff] (!%p139_p2)   ;;  %v676_v2 = vld [vmem:[%s787_s1 + $0x10] sm:$0xff] (!%p139_p2)  }
   0x6   : > { %142 = sbr.rel (%p139_p2) target bundleno = 267 (0x10b), region = 32  ;;  %p163_p3 = scmp.lt.s32.totalorder (!%p139_p2), %s508_s16, 31  ;;  %618 = vmatprep.subr.bf16.mxu0 (!%p139_p2), %v674_v0  ;;  %650 = vmatprep.subr.bf16.mxu1 (!%p139_p2), %v674_v0  ;;  %v677_v3 = vld [vmem:[%s787_s1 + $0x18] sm:$0xff] (!%p139_p2)   ;;  %v678_v10 = vld [vmem:[%s787_s1 + $0x20] sm:$0xff] (!%p139_p2)   ;;  %v679_v11 = vld [vmem:[%s787_s1 + $0x28] sm:$0xff] (!%p139_p2)  }
   0x7   : > { %619 = vmatpush3.bf16.msra.mxu0 (!%p139_p2), %v674_v0  ;;  %658 = vmatpush3.bf16.msra.mxu1 (!%p139_p2), %v674_v0  ;;  %v680_v12 = vld [vmem:[%s787_s1 + $0x30] sm:$0xff] (!%p139_p2)   ;;  %v681_v13 = vld [vmem:[%s787_s1 + $0x38] sm:$0xff] (!%p139_p2)   ;;  %v512_v33 = vld [vmem:[%s788_s2] ss:$0 sm:$0xff] (!%p139_p2) }
   0x8   : > { %620 = vmatprep.subr.bf16.mxu0 (!%p139_p2), %v675_v1  ;;  %651 = vmatprep.subr.bf16.mxu1 (!%p139_p2), %v675_v1 }
   0xb   : > { %621 = vmatpush3.bf16.msra.mxu0 (!%p139_p2), %v675_v1  ;;  %659 = vmatpush3.bf16.msra.mxu1 (!%p139_p2), %v675_v1 }
   0xc   : > { %622 = vmatprep.subr.bf16.mxu0 (!%p139_p2), %v676_v2  ;;  %652 = vmatprep.subr.bf16.mxu1 (!%p139_p2), %v676_v2 }
   0xd   : > { %s791_s16 = smov (!%p163_p3, %s508_s16), 31 }
   0xe   : > { %s509_s21 = sshll.u32 %s791_s16, 3  ;;  %s511_s10 = sshll.u32 %s791_s16, 2 }
   0xf   : > { %s733_s24 = scalar_lea.vmem %s786_s0, %s509_s21  ;;  %623 = vmatpush3.bf16.msra.mxu0 %v676_v2  ;;  %660 = vmatpush3.bf16.msra.mxu1 %v676_v2  ;;  %s773_s14 = scalar_lea.vmem %s789_s3, %s511_s10 }
  0x10   : > { %v175_v4 = vld [vmem:[%s733_s24] sm:$0xff]  ;;  %v176_v5 = vld [vmem:[%s733_s24 + $0x8] sm:$0xff]  ;;  %624 = vmatprep.subr.bf16.mxu0 %v677_v3  ;;  %653 = vmatprep.subr.bf16.mxu1 %v677_v3  ;;  %v177_v14 = vld [vmem:[%s733_s24 + $0x10] sm:$0xff] }
  0x11   : > { %v183_v6 = vld [vmem:[%s733_s24 + $0x40] sm:$0xff]  ;;  %v191_v7 = vpack.c.bf16 %v176_v5, %v175_v4  ;;  %v184_v8 = vld [vmem:[%s733_s24 + $0x48] sm:$0xff]  ;;  %v178_v15 = vld [vmem:[%s733_s24 + $0x18] sm:$0xff] }
  0x12   : > { %v195_v9 = vpack.c.bf16 %v184_v8, %v183_v6  ;;  %v185_v16 = vld [vmem:[%s733_s24 + $0x50] sm:$0xff]  ;;  %v186_v17 = vld [vmem:[%s733_s24 + $0x58] sm:$0xff]  ;;  %v179_v18 = vld [vmem:[%s733_s24 + $0x20] sm:$0xff]  ;;  %v192_v22 = vpack.c.bf16 %v178_v15, %v177_v14 }
  0x13   : > { %634 = vmatprep.mubr.bf16.mxu0 %v191_v7  ;;  %625 = vmatpush3.bf16.msra.mxu0 %v677_v3  ;;  %v180_v19 = vld [vmem:[%s733_s24 + $0x28] sm:$0xff]  ;;  %v187_v20 = vld [vmem:[%s733_s24 + $0x60] sm:$0xff]  ;;  %v196_v23 = vpack.c.bf16 %v186_v17, %v185_v16  ;;  %v181_v26 = vld [vmem:[%s733_s24 + $0x30] sm:$0xff] }
  0x14   : > { %642 = vmatprep.mubr.bf16.mxu1 %v195_v9  ;;  %661 = vmatpush3.bf16.msra.mxu1 %v677_v3  ;;  %v188_v21 = vld [vmem:[%s733_s24 + $0x68] sm:$0xff]  ;;  %v193_v24 = vpack.c.bf16 %v180_v19, %v179_v18  ;;  %v182_v27 = vld [vmem:[%s733_s24 + $0x38] sm:$0xff]  ;;  %v189_v28 = vld [vmem:[%s733_s24 + $0x70] sm:$0xff] }
  0x15   : > { %626 = vmatprep.subr.bf16.mxu0 %v678_v10  ;;  %654 = vmatprep.subr.bf16.mxu1 %v678_v10  ;;  %v197_v25 = vpack.c.bf16 %v188_v21, %v187_v20  ;;  %v190_v29 = vld [vmem:[%s733_s24 + $0x78] sm:$0xff]  ;;  %v194_v30 = vpack.c.bf16 %v182_v27, %v181_v26 }
  0x16   : > { %v198_v31 = vpack.c.bf16 %v190_v29, %v189_v28 }
  0x17   : > { %627 = vmatpush3.bf16.msra.mxu0 %v678_v10 }
  0x18   : > { %662 = vmatpush3.bf16.msra.mxu1 %v678_v10  ;;  %628 = vmatprep.subr.bf16.mxu0 %v679_v11 }
  0x19   : > { %655 = vmatprep.subr.bf16.mxu1 %v679_v11 }
  0x1b   : > { %629 = vmatpush3.bf16.msra.mxu0 %v679_v11 }
  0x1c   : > { %663 = vmatpush3.bf16.msra.mxu1 %v679_v11  ;;  %630 = vmatprep.subr.bf16.mxu0 %v680_v12 }
  0x1d   : > { %656 = vmatprep.subr.bf16.mxu1 %v680_v12 }
  0x1f   : > { %631 = vmatpush3.bf16.msra.mxu0 %v680_v12 }
  0x20   : > { %664 = vmatpush3.bf16.msra.mxu1 %v680_v12  ;;  %632 = vmatprep.subr.bf16.mxu0 %v681_v13 }
  0x21   : > { %657 = vmatprep.subr.bf16.mxu1 %v681_v13 }
  0x23   : > { %633 = vmatpush3.bf16.msra.mxu0 %v681_v13 }
  0x24   : > { %665 = vmatpush3.bf16.msra.mxu1 %v681_v13 }
  0x26   : > { %635 = vmatmul.mubr.bf16.vlgmr.msra.gmra.mrb[0].mxu0 %v192_v22 }
  0x27   : > { %643 = vmatmul.mubr.bf16.vlgmr.msra.gmra.mrb[0].mxu1 %v196_v23  ;;  %638 = vmatprep.mubr.bf16.mxu0 %v193_v24 }
  0x28   : > { %646 = vmatprep.mubr.bf16.mxu1 %v197_v25 }
  0x2e   : > { %639 = vmatmul.mubr.bf16.gmra.mrb[4].mxu0 %v194_v30 }
  0x2f   : > { %647 = vmatmul.mubr.bf16.gmra.mrb[4].mxu1 %v198_v31 }
  0xf9   : > { %v636_v32 = vpop.f32.mrb[0].mxu0 }
  0xfa   : > { %v644_v34 = vpop.f32.mrb[0].mxu1  ;;  %v304_v35 = vpop.f32.mrb[1].mxu0  ;;  %v313_v39 = vadd.f32 %v636_v32, %v512_v33 }
  0xfb   : > { %v336_v36 = vpop.f32.mrb[1].mxu1  ;;  %v637_v37 = vpop.f32.mrb[2].mxu0  ;;  %v345_v40 = vadd.f32 %v644_v34, %v512_v33  ;;  %v305_v45 = vadd.f32 %v512_v33, %v304_v35 }
  0xfc   : > { %v645_v38 = vpop.f32.mrb[2].mxu1  ;;  %v316_v41 = vadd.f32 %v637_v37, %v512_v33  ;;  %v307_v43 = vpop.f32.mrb[3].mxu0  ;;  %v337_v46 = vadd.f32 %v512_v33, %v336_v36 }
  0xfd   : > { %v348_v42 = vadd.f32 %v645_v38, %v512_v33  ;;  %v339_v44 = vpop.f32.mrb[3].mxu1  ;;  %v308_v47 = vadd.f32 %v512_v33, %v307_v43 }
  0xfe   : > { %v340_v48 = vadd.f32 %v512_v33, %v339_v44  ;;  %v563_v49 = vpack.c.bf16 %v316_v41, %v313_v39 }
  0xff   : > { %v583_v50 = vpack.c.bf16 %v348_v42, %v345_v40  ;;  %v558_v51 = vpack.c.bf16 %v308_v47, %v305_v45 }
 0x100   : > { %v578_v52 = vpack.c.bf16 %v340_v48, %v337_v46  ;;  %595 = vst [vmem:[%s773_s14 + $0x8] sm:$0xff] %v563_v49  }
 0x101   : > { %599 = vst [vmem:[%s773_s14 + $0x28] sm:$0xff] %v583_v50   ;;  %559 = vst [vmem:[%s773_s14] sm:$0xff] %v558_v51   ;;  %v640_v53 = vpop.f32.mrb[4].mxu0 }
 0x102   : > { %598 = vst [vmem:[%s773_s14 + $0x20] sm:$0xff] %v578_v52   ;;  %v648_v54 = vpop.f32.mrb[4].mxu1  ;;  %v320_v55 = vpop.f32.mrb[5].mxu0  ;;  %v329_v59 = vadd.f32 %v640_v53, %v512_v33 }
 0x103   : > { %v352_v56 = vpop.f32.mrb[5].mxu1  ;;  %v641_v57 = vpop.f32.mrb[6].mxu0  ;;  %v361_v60 = vadd.f32 %v648_v54, %v512_v33  ;;  %v321_v1 = vadd.f32 %v512_v33, %v320_v55 }
 0x104   : > { %v649_v58 = vpop.f32.mrb[6].mxu1  ;;  %v332_v61 = vadd.f32 %v641_v57, %v512_v33  ;;  %v323_v63 = vpop.f32.mrb[7].mxu0  ;;  %v353_v2 = vadd.f32 %v512_v33, %v352_v56 }
 0x105   : > { %v364_v62 = vadd.f32 %v649_v58, %v512_v33  ;;  %v355_v0 = vpop.f32.mrb[7].mxu1  ;;  %v324_v3 = vadd.f32 %v512_v33, %v323_v63 }
 0x106   : > { %v356_v4 = vadd.f32 %v512_v33, %v355_v0  ;;  %v573_v5 = vpack.c.bf16 %v332_v61, %v329_v59 }
 0x107   : > { %v593_v6 = vpack.c.bf16 %v364_v62, %v361_v60  ;;  %v568_v7 = vpack.c.bf16 %v324_v3, %v321_v1 }
 0x108   : > { %v588_v8 = vpack.c.bf16 %v356_v4, %v353_v2  ;;  %597 = vst [vmem:[%s773_s14 + $0x18] sm:$0xff] %v573_v5  }
 0x109   : > { %601 = vst [vmem:[%s773_s14 + $0x38] sm:$0xff] %v593_v6   ;;  %596 = vst [vmem:[%s773_s14 + $0x10] sm:$0xff] %v568_v7  }
 0x10a   : > { %600 = vst [vmem:[%s773_s14 + $0x30] sm:$0xff] %v588_v8  }
 0x10b PF: > { %s13_s12 = sadd.s32 1, %s688_s12  }
 0x10c   : > { %p10_p4 = scmp.ge.s32.totalorder %s13_s12, 4  }
 0x10e   :  { %12 = sbr.rel (!%p10_p4) target bundleno = 1 (0x1), region = 62 }

// kernel: alpha_k_gnn_stage.5
= control target key start
LH: loop header
LB: loop body
LE: loop exit
PB: predicated region body
PF: predicated region fallthrough
CT: control target
= control target key end

     0   :  { %s1195_s12 = smov 0   ;;  %s1197_s13 = smov 0   ;;  %s1523_s0 = inlined_call_operand.vmem [shape: bf16[256,256], index: 0, kind: input, shape index: {}]   ;;  %s1524_s1 = inlined_call_operand.vmem [shape: bf16[256,128], index: 1, kind: input, shape index: {}]   ;;  %s1525_s2 = inlined_call_operand.vmem [shape: f32[256,128], index: 2, kind: input, shape index: {}]   ;;  %s1526_s3 = inlined_call_operand.vmem [shape: f32[256,128], index: 3, kind: output, shape index: {}]  }
   0x1   :  { %s1199_s14 = smov 0   ;;  %s1201_s15 = smov 0  }
   0x2   :  { %s1203_s16 = smov 0   ;;  %s1205_s17 = smov 0  }
   0x3   :  { %s1207_s18 = smov 0  }
   0x4 LB: > { %s22_s19 = sadd.s32 1, %s1165_s16  ;;  %s25_s20 = sadd.s32 1, %s1169_s17  ;;  %s1173_s18 = sphi %s1207_s18, %s13_s18   ;;  %s1169_s17 = sphi %s1205_s17, %s1532_s17   ;;  %s1165_s16 = sphi %s1203_s16, %s1531_s16   ;;  %s1161_s15 = sphi %s1201_s15, %s1530_s15   ;;  %s1157_s14 = sphi %s1199_s14, %s1529_s14   ;;  %s1153_s13 = sphi %s1197_s13, %s1528_s13   ;;  %s1149_s12 = sphi %s1195_s12, %s1527_s12  }
   0x5   : > { %p23_p0 = scmp.ge.s32.totalorder %s22_s19, 2  ;;  %p41_p1 = scmp.ne.s32.totalorder %s1153_s13, %s1149_s12 }
   0x6   : > { %p42_p2 = scmp.eq.s32.totalorder %s1173_s18, 0  ;;  %s34_s24 = sadd.s32 1, %s1153_s13 }
   0x7   : > { %s1534_s19 = smov (%p23_p0, %s22_s19), 0  ;;  %s1536_s20 = smov (!%p23_p0, %s25_s20), %s1169_s17 }
   0x8   : > { %p43_p3 = por %p42_p2, %p41_p1  ;;  %p27_p4 = scmp.ge.s32.totalorder %s1536_s20, 2 }
   0x9   : > { %s30_s21 = ssub.s32 %s1165_s16, %s1534_s19  ;;  %p916_p6 = scmp.ge.s32.totalorder %s1173_s18, 4 }
   0xa   : > { %s1538_s20 = smov (%p27_p4, %s1536_s20), 0 }
   0xb   : > { %s29_s22 = ssub.s32 %s1169_s17, %s1538_s20  ;;  %145 = sbr.rel (%p916_p6) target bundleno = 34 (0x22), region = 16 }
   0xc   : > { %s31_s23 = sor.u32 %s30_s21, %s29_s22 }
   0xd   : > { %p32_p5 = scmp.eq.s32.totalorder %s31_s23, 0 }
   0xf   : > { %s1246_s25 = scalar_select %p32_p5, %s1153_s13, %s34_s24  }
  0x12   : > { %148 = sbr.rel (!%p43_p3) target bundleno = 34 (0x22), region = 20  ;;  %s150_s26 = sand.u32 (%p43_p3), 1, %s1153_s13  }
  0x13   : > { %s950_s27 = sshll.u32 (%p43_p3), %s1169_s17, 5  ;;  %s917_s28 = sshll.u32 (%p43_p3), %s150_s26, 6 }
  0x14   : > { %s155_s29 = sadd.s32 (%p43_p3), %s1165_s16, %s950_s27  ;;  %s152_s7 = scalar_lea.vmem (%p43_p3), [#allocation2], %s917_s28 }
  0x15   : > { %s920_s30 = sshll.u32 (%p43_p3), %s155_s29, 2 }
  0x16   : > { %s1255_s6 = scalar_lea.vmem (%p43_p3), %s1523_s0, %s920_s30 }
  0x17   : > { %v173_v0 = vld [vmem:[%s1255_s6] sm:$0xf] (%p43_p3)  ;;  %v175_v1 = vld [vmem:[%s1255_s6 + $0x8] sm:$0xf] (%p43_p3)  ;;  %v177_v2 = vld [vmem:[%s1255_s6 + $0x10] sm:$0xf] (%p43_p3) }
  0x18   : > { %174 = vst [vmem:[%s152_s7] sm:$0xf] (%p43_p3), %v173_v0  ;;  %176 = vst [vmem:[%s152_s7 + $0x4] sm:$0xf] (%p43_p3), %v175_v1  ;;  %v179_v3 = vld [vmem:[%s1255_s6 + $0x18] sm:$0xf] (%p43_p3) }
  0x19   : > { %178 = vst [vmem:[%s152_s7 + $0x8] sm:$0xf] %v177_v2  ;;  %v181_v4 = vld [vmem:[%s1255_s6 + $0x20] sm:$0xf]  ;;  %v183_v5 = vld [vmem:[%s1255_s6 + $0x28] sm:$0xf] }
  0x1a   : > { %180 = vst [vmem:[%s152_s7 + $0xc] sm:$0xf] %v179_v3  ;;  %182 = vst [vmem:[%s152_s7 + $0x10] sm:$0xf] %v181_v4  ;;  %v185_v6 = vld [vmem:[%s1255_s6 + $0x30] sm:$0xf] }
  0x1b   : > { %184 = vst [vmem:[%s152_s7 + $0x14] sm:$0xf] %v183_v5  ;;  %v187_v7 = vld [vmem:[%s1255_s6 + $0x38] sm:$0xf]  ;;  %v189_v8 = vld [vmem:[%s1255_s6 + $0x40] sm:$0xf] }
  0x1c   : > { %186 = vst [vmem:[%s152_s7 + $0x18] sm:$0xf] %v185_v6  ;;  %188 = vst [vmem:[%s152_s7 + $0x1c] sm:$0xf] %v187_v7  ;;  %v191_v9 = vld [vmem:[%s1255_s6 + $0x48] sm:$0xf] }
  0x1d   : > { %190 = vst [vmem:[%s152_s7 + $0x20] sm:$0xf] %v189_v8  ;;  %v193_v10 = vld [vmem:[%s1255_s6 + $0x50] sm:$0xf]  ;;  %v195_v11 = vld [vmem:[%s1255_s6 + $0x58] sm:$0xf] }
  0x1e   : > { %192 = vst [vmem:[%s152_s7 + $0x24] sm:$0xf] %v191_v9  ;;  %194 = vst [vmem:[%s152_s7 + $0x28] sm:$0xf] %v193_v10  ;;  %v197_v12 = vld [vmem:[%s1255_s6 + $0x60] sm:$0xf] }
  0x1f   : > { %196 = vst [vmem:[%s152_s7 + $0x2c] sm:$0xf] %v195_v11  ;;  %v199_v13 = vld [vmem:[%s1255_s6 + $0x68] sm:$0xf]  ;;  %v201_v14 = vld [vmem:[%s1255_s6 + $0x70] sm:$0xf] }
  0x20   : > { %198 = vst [vmem:[%s152_s7 + $0x30] sm:$0xf] %v197_v12  ;;  %200 = vst [vmem:[%s152_s7 + $0x34] sm:$0xf] %v199_v13  ;;  %v203_v15 = vld [vmem:[%s1255_s6 + $0x78] sm:$0xf] }
  0x21   : > { %202 = vst [vmem:[%s152_s7 + $0x38] sm:$0xf] %v201_v14  ;;  %204 = vst [vmem:[%s152_s7 + $0x3c] sm:$0xf] %v203_v15 }
  0x22 PF: > { %p921_p7 = scmp.ge.s32.totalorder %s1173_s18, 1  ;;  %p276_p8 = scmp.lt.s32.totalorder %s1173_s18, 5 }
  0x24   : > { %p277_p9 = pnand %p921_p7, %p276_p8 }
  0x25   : > { %s923_s8 = sshll.u32 (!%p277_p9), %s1157_s14, 4  ;;  %s925_s9 = sshll.u32 (!%p277_p9), %s1161_s15, 4 }
  0x26   : > { %280 = sbr.rel (%p277_p9) target bundleno = 515 (0x203), region = 69  ;;  %p318_p10 = scmp.lt.s32.totalorder (!%p277_p9), %s923_s8, 31 }
  0x27   : > { %p324_p11 = scmp.lt.s32.totalorder (!%p277_p9), %s925_s9, 31  ;;  %s283_s11 = sand.u32 (!%p277_p9), 1, %s1149_s12  }
  0x28   : > { %s922_s12 = sshll.u32 (!%p277_p9), %s283_s11, 6  ;;  %p945_p12 = scmp.ne.s32.totalorder (!%p277_p9), %s1157_s14, 0 }
  0x29   : > { %s1297_s4 = scalar_lea.vmem (!%p277_p9), [#allocation2], %s922_s12 }
  0x2a   : > { %v1079_v20 = vld [vmem:[%s1297_s4] sm:$0xff] (!%p277_p9)   ;;  %v1081_v26 = vld [vmem:[%s1297_s4 + $0x8] sm:$0xff] (!%p277_p9)   ;;  %v1083_v28 = vld [vmem:[%s1297_s4 + $0x10] sm:$0xff] (!%p277_p9)  }
  0x2b   : > { %v1080_v21 = vld [vmem:[%s1297_s4 + $0x20] sm:$0xff] (!%p277_p9)   ;;  %983 = vmatprep.mubr.bf16.mxu0 (!%p277_p9), %v1079_v20  ;;  %v1082_v27 = vld [vmem:[%s1297_s4 + $0x28] sm:$0xff] (!%p277_p9)   ;;  %v1084_v29 = vld [vmem:[%s1297_s4 + $0x30] sm:$0xff] (!%p277_p9)  }
  0x2c   : > { %991 = vmatprep.mubr.bf16.mxu1 (!%p277_p9), %v1080_v21  ;;  %v1085_v30 = vld [vmem:[%s1297_s4 + $0x18] sm:$0xff] (!%p277_p9)  }
  0x2d   : > { %s1540_s8 = smov (!%p318_p10, %s923_s8), 31  ;;  %s1542_s9 = smov (!%p324_p11, %s925_s9), 31  ;;  %v1086_v31 = vld [vmem:[%s1297_s4 + $0x38] sm:$0xff]  }
  0x2e   : > { %s924_s10 = sshll.u32 %s1540_s8, 2  ;;  %s926_s24 = sshll.u32 %s1542_s9, 3 }
  0x2f   : > { %s1281_s23 = scalar_lea.vmem %s1524_s1, %s924_s10  ;;  %s1286_s15 = scalar_lea.vmem %s1525_s2, %s926_s24 }
  0x30   : > { %s1291_s30 = scalar_lea.vmem %s1526_s3, %s926_s24  ;;  %v1071_v16 = vld [vmem:[%s1281_s23] sm:$0xff]   ;;  %v1072_v17 = vld [vmem:[%s1281_s23 + $0x8] sm:$0xff]   ;;  %v1073_v18 = vld [vmem:[%s1281_s23 + $0x10] sm:$0xff]  }
  0x31   : > { %967 = vmatprep.subr.bf16.mxu0 %v1071_v16  ;;  %999 = vmatprep.subr.bf16.mxu1 %v1071_v16  ;;  %v1074_v19 = vld [vmem:[%s1281_s23 + $0x18] sm:$0xff]   ;;  %v1075_v22 = vld [vmem:[%s1281_s23 + $0x20] sm:$0xff]   ;;  %v1076_v23 = vld [vmem:[%s1281_s23 + $0x28] sm:$0xff]  }
  0x32   : > { %968 = vmatpush3.bf16.msra.mxu0 %v1071_v16  ;;  %1007 = vmatpush3.bf16.msra.mxu1 %v1071_v16  ;;  %v1077_v24 = vld [vmem:[%s1281_s23 + $0x30] sm:$0xff]   ;;  %v1078_v25 = vld [vmem:[%s1281_s23 + $0x38] sm:$0xff]  }
  0x33   : > { %969 = vmatprep.subr.bf16.mxu0 %v1072_v17  ;;  %1000 = vmatprep.subr.bf16.mxu1 %v1072_v17 }
  0x36   : > { %970 = vmatpush3.bf16.msra.mxu0 %v1072_v17  ;;  %1008 = vmatpush3.bf16.msra.mxu1 %v1072_v17 }
  0x37   : > { %971 = vmatprep.subr.bf16.mxu0 %v1073_v18  ;;  %1001 = vmatprep.subr.bf16.mxu1 %v1073_v18 }
  0x3a   : > { %972 = vmatpush3.bf16.msra.mxu0 %v1073_v18  ;;  %1009 = vmatpush3.bf16.msra.mxu1 %v1073_v18 }
  0x3b   : > { %973 = vmatprep.subr.bf16.mxu0 %v1074_v19  ;;  %1002 = vmatprep.subr.bf16.mxu1 %v1074_v19 }
  0x3e   : > { %974 = vmatpush3.bf16.msra.mxu0 %v1074_v19  ;;  %1010 = vmatpush3.bf16.msra.mxu1 %v1074_v19 }
  0x3f   : > { %975 = vmatprep.subr.bf16.mxu0 %v1075_v22  ;;  %1003 = vmatprep.subr.bf16.mxu1 %v1075_v22 }
  0x42   : > { %976 = vmatpush3.bf16.msra.mxu0 %v1075_v22  ;;  %1011 = vmatpush3.bf16.msra.mxu1 %v1075_v22 }
  0x43   : > { %977 = vmatprep.subr.bf16.mxu0 %v1076_v23  ;;  %1004 = vmatprep.subr.bf16.mxu1 %v1076_v23 }
  0x46   : > { %978 = vmatpush3.bf16.msra.mxu0 %v1076_v23  ;;  %1012 = vmatpush3.bf16.msra.mxu1 %v1076_v23 }
  0x47   : > { %979 = vmatprep.subr.bf16.mxu0 %v1077_v24  ;;  %1005 = vmatprep.subr.bf16.mxu1 %v1077_v24 }
  0x4a   : > { %980 = vmatpush3.bf16.msra.mxu0 %v1077_v24  ;;  %1013 = vmatpush3.bf16.msra.mxu1 %v1077_v24 }
  0x4b   : > { %981 = vmatprep.subr.bf16.mxu0 %v1078_v25  ;;  %1006 = vmatprep.subr.bf16.mxu1 %v1078_v25 }
  0x4e   : > { %982 = vmatpush3.bf16.msra.mxu0 %v1078_v25  ;;  %1014 = vmatpush3.bf16.msra.mxu1 %v1078_v25 }
  0x51   : > { %984 = vmatmul.mubr.bf16.vlgmr.msra.gmra.mrb[0].mxu0 %v1081_v26  ;;  %992 = vmatmul.mubr.bf16.vlgmr.msra.gmra.mrb[0].mxu1 %v1082_v27 }
  0x52   : > { %987 = vmatprep.mubr.bf16.mxu0 %v1083_v28  ;;  %995 = vmatprep.mubr.bf16.mxu1 %v1084_v29 }
  0x59   : > { %988 = vmatmul.mubr.bf16.gmra.mrb[4].mxu0 %v1085_v30  ;;  %996 = vmatmul.mubr.bf16.gmra.mrb[4].mxu1 %v1086_v31 }
 0x124   : > { %v985_v32 = vpop.f32.mrb[0].mxu0  ;;  %v1311_v33 = vpop.f32.mrb[0].mxu1 }
 0x125   : > { %v498_v34 = vpop.f32.mrb[1].mxu0  ;;  %v530_v35 = vpop.f32.mrb[1].mxu1  ;;  %567 = vst [vmem:[%s1291_s30 + $0x10] sm:$0xff] (!%p945_p12), %v985_v32  ;;  %575 = vst [vmem:[%s1291_s30 + $0x50] sm:$0xff] (!%p945_p12), %v1311_v33 }
 0x126   : > { %v986_v36 = vpop.f32.mrb[2].mxu0  ;;  %v994_v37 = vpop.f32.mrb[2].mxu1  ;;  %565 = vst [vmem:[%s1291_s30] sm:$0xff] (!%p945_p12), %v498_v34  ;;  %573 = vst [vmem:[%s1291_s30 + $0x40] sm:$0xff] (!%p945_p12), %v530_v35 }
 0x127   : > { %v501_v38 = vpop.f32.mrb[3].mxu0  ;;  %v533_v39 = vpop.f32.mrb[3].mxu1  ;;  %568 = vst [vmem:[%s1291_s30 + $0x18] sm:$0xff] (!%p945_p12), %v986_v36  ;;  %576 = vst [vmem:[%s1291_s30 + $0x58] sm:$0xff] (!%p945_p12), %v994_v37 }
 0x128   : > { %566 = vst [vmem:[%s1291_s30 + $0x8] sm:$0xff] (!%p945_p12), %v501_v38  ;;  %574 = vst [vmem:[%s1291_s30 + $0x48] sm:$0xff] (!%p945_p12), %v533_v39 }
 0x129   : > { %564 = sbr.rel (%p945_p12) target bundleno = 305 (0x131), region = 77 }
 0x12c   : > { %v989_v40 = vpop.f32.mrb[4].mxu0  ;;  %v1313_v41 = vpop.f32.mrb[4].mxu1 }
 0x12d   : > { %v514_v42 = vpop.f32.mrb[5].mxu0  ;;  %v546_v43 = vpop.f32.mrb[5].mxu1  ;;  %571 = vst [vmem:[%s1291_s30 + $0x30] sm:$0xff] (!%p945_p12), %v989_v40  ;;  %579 = vst [vmem:[%s1291_s30 + $0x70] sm:$0xff] (!%p945_p12), %v1313_v41 }
 0x12e   : > { %v990_v44 = vpop.f32.mrb[6].mxu0  ;;  %v1315_v45 = vpop.f32.mrb[6].mxu1  ;;  %569 = vst [vmem:[%s1291_s30 + $0x20] sm:$0xff] (!%p945_p12), %v514_v42  ;;  %577 = vst [vmem:[%s1291_s30 + $0x60] sm:$0xff] (!%p945_p12), %v546_v43 }
 0x12f   : > { %v517_v46 = vpop.f32.mrb[7].mxu0  ;;  %v549_v47 = vpop.f32.mrb[7].mxu1  ;;  %572 = vst [vmem:[%s1291_s30 + $0x38] sm:$0xff] (!%p945_p12), %v990_v44  ;;  %580 = vst [vmem:[%s1291_s30 + $0x78] sm:$0xff] (!%p945_p12), %v1315_v45 }
 0x130   : > { %570 = vst [vmem:[%s1291_s30 + $0x28] sm:$0xff] %v517_v46  ;;  %578 = vst [vmem:[%s1291_s30 + $0x68] sm:$0xff] %v549_v47 }
 0x131 PF: > { %p946_p13 = scmp.le.s32.totalorder %s1157_s14, 0 }
 0x132   : > { %v585_v48 = vld [vmem:[%s1291_s30] sm:$0xff] (!%p946_p13)  ;;  %v586_v49 = vld [vmem:[%s1291_s30 + $0x8] sm:$0xff] (!%p946_p13)  ;;  %v587_v50 = vld [vmem:[%s1291_s30 + $0x10] sm:$0xff] (!%p946_p13) }
 0x133   : > { %584 = sbr.rel (%p946_p13) target bundleno = 318 (0x13e), region = 81  ;;  %v601_v51 = vadd.f32 (!%p946_p13), %v585_v48, %v498_v34  ;;  %v602_v52 = vadd.f32 (!%p946_p13), %v586_v49, %v501_v38  ;;  %v603_v53 = vadd.f32 (!%p946_p13), %v985_v32, %v587_v50  ;;  %v588_v54 = vld [vmem:[%s1291_s30 + $0x18] sm:$0xff] (!%p946_p13)  ;;  %v593_v62 = vld [vmem:[%s1291_s30 + $0x40] sm:$0xff] (!%p946_p13)  ;;  %v594_v2 = vld [vmem:[%s1291_s30 + $0x48] sm:$0xff] (!%p946_p13) }
 0x134   : > { %v604_v57 = vadd.f32 (!%p946_p13), %v986_v36, %v588_v54  ;;  %v609_v1 = vadd.f32 (!%p946_p13), %v593_v62, %v530_v35  ;;  %v595_v3 = vld [vmem:[%s1291_s30 + $0x50] sm:$0xff] (!%p946_p13)  ;;  %v596_v4 = vld [vmem:[%s1291_s30 + $0x58] sm:$0xff] (!%p946_p13)  ;;  %v610_v5 = vadd.f32 (!%p946_p13), %v594_v2, %v533_v39 }
 0x135   : > { %v591_v60 = vld [vmem:[%s1291_s30 + $0x30] sm:$0xff] (!%p946_p13)  ;;  %617 = vst [vmem:[%s1291_s30] sm:$0xff] (!%p946_p13), %v601_v51  ;;  %618 = vst [vmem:[%s1291_s30 + $0x8] sm:$0xff] (!%p946_p13), %v602_v52  ;;  %v611_v6 = vadd.f32 (!%p946_p13), %v1311_v33, %v595_v3  ;;  %v612_v7 = vadd.f32 (!%p946_p13), %v994_v37, %v596_v4 }
 0x136   : > { %v589_v55 = vld [vmem:[%s1291_s30 + $0x20] sm:$0xff] (!%p946_p13)  ;;  %619 = vst [vmem:[%s1291_s30 + $0x10] sm:$0xff] (!%p946_p13), %v603_v53  ;;  %v607_v63 = vadd.f32 (!%p946_p13), %v989_v40, %v591_v60  ;;  %620 = vst [vmem:[%s1291_s30 + $0x18] sm:$0xff] (!%p946_p13), %v604_v57  ;;  %v599_v10 = vld [vmem:[%s1291_s30 + $0x70] sm:$0xff] (!%p946_p13) }
 0x137   : > { %v590_v56 = vld [vmem:[%s1291_s30 + $0x28] sm:$0xff] (!%p946_p13)  ;;  %v605_v58 = vadd.f32 (!%p946_p13), %v589_v55, %v514_v42  ;;  %v592_v61 = vld [vmem:[%s1291_s30 + $0x38] sm:$0xff] (!%p946_p13)  ;;  %v597_v8 = vld [vmem:[%s1291_s30 + $0x60] sm:$0xff] (!%p946_p13)  ;;  %625 = vst [vmem:[%s1291_s30 + $0x40] sm:$0xff] (!%p946_p13), %v609_v1  ;;  %v615_v13 = vadd.f32 (!%p946_p13), %v1313_v41, %v599_v10 }
 0x138   : > { %v606_v59 = vadd.f32 (!%p946_p13), %v590_v56, %v517_v46  ;;  %v608_v0 = vadd.f32 (!%p946_p13), %v990_v44, %v592_v61  ;;  %v598_v9 = vld [vmem:[%s1291_s30 + $0x68] sm:$0xff] (!%p946_p13)  ;;  %623 = vst [vmem:[%s1291_s30 + $0x30] sm:$0xff] (!%p946_p13), %v607_v63  ;;  %v613_v11 = vadd.f32 (!%p946_p13), %v597_v8, %v546_v43  ;;  %v600_v14 = vld [vmem:[%s1291_s30 + $0x78] sm:$0xff] (!%p946_p13)  ;;  %626 = vst [vmem:[%s1291_s30 + $0x48] sm:$0xff] (!%p946_p13), %v610_v5 }
 0x139   : > { %621 = vst [vmem:[%s1291_s30 + $0x20] sm:$0xff] (!%p946_p13), %v605_v58  ;;  %v614_v12 = vadd.f32 (!%p946_p13), %v598_v9, %v549_v47  ;;  %627 = vst [vmem:[%s1291_s30 + $0x50] sm:$0xff] (!%p946_p13), %v611_v6  ;;  %v616_v15 = vadd.f32 (!%p946_p13), %v1315_v45, %v600_v14 }
 0x13a   : > { %622 = vst [vmem:[%s1291_s30 + $0x28] sm:$0xff] %v606_v59  ;;  %624 = vst [vmem:[%s1291_s30 + $0x38] sm:$0xff] %v608_v0 }
 0x13b   : > { %628 = vst [vmem:[%s1291_s30 + $0x58] sm:$0xff] %v612_v7  ;;  %629 = vst [vmem:[%s1291_s30 + $0x60] sm:$0xff] %v613_v11 }
 0x13c   : > { %630 = vst [vmem:[%s1291_s30 + $0x68] sm:$0xff] %v614_v12  ;;  %631 = vst [vmem:[%s1291_s30 + $0x70] sm:$0xff] %v615_v13 }
 0x13d   : > { %632 = vst [vmem:[%s1291_s30 + $0x78] sm:$0xff] %v616_v15 }
 0x13e PF: > { %p947_p0 = scmp.ne.s32.totalorder %s1157_s14, 1 }
 0x13f   : > { %v639_v16 = vld [vmem:[%s1286_s15 + $0x10] sm:$0xff] (!%p947_p0)  ;;  %v637_v18 = vld [vmem:[%s1286_s15] sm:$0xff] (!%p947_p0)  ;;  %v640_v21 = vld [vmem:[%s1286_s15 + $0x18] sm:$0xff] (!%p947_p0) }
 0x140   : > { %636 = sbr.rel (%p947_p0) target bundleno = 515 (0x203), region = 85  ;;  %v653_v20 = vld [vmem:[%s1291_s30] sm:$0xff] (!%p947_p0)  ;;  %v638_v25 = vld [vmem:[%s1286_s15 + $0x8] sm:$0xff] (!%p947_p0)  ;;  %v644_v47 = vld [vmem:[%s1286_s15 + $0x38] sm:$0xff] (!%p947_p0) }
 0x141   : > { %v655_v17 = vld [vmem:[%s1291_s30 + $0x10] sm:$0xff] (!%p947_p0)  ;;  %v656_v22 = vld [vmem:[%s1291_s30 + $0x18] sm:$0xff] (!%p947_p0)  ;;  %v669_v23 = vmax.f32 (!%p947_p0), %v653_v20, 0.0  ;;  %v654_v26 = vld [vmem:[%s1291_s30 + $0x8] sm:$0xff] (!%p947_p0) }
 0x142   : > { %v671_v19 = vmax.f32 (!%p947_p0), %v655_v17, 0.0  ;;  %v672_v24 = vmax.f32 (!%p947_p0), %v656_v22, 0.0  ;;  %v670_v28 = vmax.f32 (!%p947_p0), %v654_v26, 0.0  ;;  %v642_v33 = vld [vmem:[%s1286_s15 + $0x28] sm:$0xff] (!%p947_p0)  ;;  %v641_v39 = vld [vmem:[%s1286_s15 + $0x20] sm:$0xff] (!%p947_p0)  ;;  %v643_v50 = vld [vmem:[%s1286_s15 + $0x30] sm:$0xff] (!%p947_p0) }
 0x143   : > { %v1386_v31 = vadd.f32 (!%p947_p0), %v669_v23, %v637_v18  ;;  %v659_v40 = vld [vmem:[%s1291_s30 + $0x30] sm:$0xff] (!%p947_p0)  ;;  %v662_v49 = vld [vmem:[%s1291_s30 + $0x48] sm:$0xff] (!%p947_p0)  ;;  %v661_v51 = vld [vmem:[%s1291_s30 + $0x40] sm:$0xff] (!%p947_p0) }
 0x144   : > { %v1382_v27 = vadd.f32 (!%p947_p0), %v671_v19, %v639_v16  ;;  %v657_v30 = vld [vmem:[%s1291_s30 + $0x20] sm:$0xff] (!%p947_p0)  ;;  %v1388_v32 = vadd.f32 (!%p947_p0), %v672_v24, %v640_v21  ;;  %v1394_v38 = vadd.f32 (!%p947_p0), %v670_v28, %v638_v25  ;;  %v675_v48 = vmax.f32 (!%p947_p0), %v659_v40, 0.0  ;;  %v646_v57 = vld [vmem:[%s1286_s15 + $0x48] sm:$0xff] (!%p947_p0)  ;;  %v664_v59 = vld [vmem:[%s1291_s30 + $0x58] sm:$0xff] (!%p947_p0) }
 0x145   : > { %v658_v29 = vld [vmem:[%s1291_s30 + $0x28] sm:$0xff] (!%p947_p0)  ;;  %v673_v35 = vmax.f32 (!%p947_p0), %v657_v30, 0.0  ;;  %v660_v36 = vld [vmem:[%s1291_s30 + $0x38] sm:$0xff] (!%p947_p0)  ;;  %v701_v41 = vmul.f32 (!%p947_p0), %v1386_v31, %v1386_v31  ;;  %v678_v54 = vmax.f32 (!%p947_p0), %v662_v49, 0.0  ;;  %v677_v58 = vmax.f32 (!%p947_p0), %v661_v51, 0.0  ;;  %v645_v60 = vld [vmem:[%s1286_s15 + $0x40] sm:$0xff] (!%p947_p0) }
 0x146   : > { %v674_v34 = vmax.f32 (!%p947_p0), %v658_v29, 0.0  ;;  %v703_v37 = vmul.f32 (!%p947_p0), %v1382_v27, %v1382_v27  ;;  %v704_v42 = vmul.f32 (!%p947_p0), %v1388_v32, %v1388_v32  ;;  %v676_v44 = vmax.f32 (!%p947_p0), %v660_v36, 0.0  ;;  %v663_v61 = vld [vmem:[%s1291_s30 + $0x50] sm:$0xff] (!%p947_p0)  ;;  %v648_v3 = vld [vmem:[%s1286_s15 + $0x58] sm:$0xff] (!%p947_p0)  ;;  %v666_v5 = vld [vmem:[%s1291_s30 + $0x68] sm:$0xff] (!%p947_p0) }
 0x147   : > { %717 = vadd.xlane.f32.xlu0 %v701_v41  ;;  %v702_v45 = vmul.f32 %v1394_v38, %v1394_v38  ;;  %v1406_v46 = vadd.f32 %v673_v35, %v641_v39  ;;  %v1418_v56 = vadd.f32 %v675_v48, %v643_v50  ;;  %v1426_v63 = vadd.f32 %v678_v54, %v646_v57  ;;  %v647_v6 = vld [vmem:[%s1286_s15 + $0x50] sm:$0xff]  ;;  %v665_v7 = vld [vmem:[%s1291_s30 + $0x60] sm:$0xff]  ;;  %v650_v13 = vld [vmem:[%s1286_s15 + $0x68] sm:$0xff] }
 0x148   : > { %721 = vadd.xlane.f32.xlu1 %v703_v37  ;;  %v1402_v43 = vadd.f32 %v674_v34, %v642_v33  ;;  %v1414_v53 = vadd.f32 %v676_v44, %v644_v47  ;;  %v680_v0 = vmax.f32 %v664_v59, 0.0  ;;  %v1430_v2 = vadd.f32 %v677_v58, %v645_v60  ;;  %v668_v15 = vld [vmem:[%s1291_s30 + $0x78] sm:$0xff]  ;;  %v649_v16 = vld [vmem:[%s1286_s15 + $0x60] sm:$0xff]  ;;  %v667_v17 = vld [vmem:[%s1291_s30 + $0x70] sm:$0xff] }
 0x149   : > { %v705_v55 = vmul.f32 %v1406_v46, %v1406_v46  ;;  %v707_v1 = vmul.f32 %v1418_v56, %v1418_v56  ;;  %v679_v4 = vmax.f32 %v663_v61, 0.0  ;;  %v710_v8 = vmul.f32 %v1426_v63, %v1426_v63  ;;  %v652_v23 = vld [vmem:[%s1286_s15 + $0x78] sm:$0xff]  ;;  %v651_v25 = vld [vmem:[%s1286_s15 + $0x70] sm:$0xff] }
 0x14a   : > { %v706_v52 = vmul.f32 %v1402_v43, %v1402_v43  ;;  %v708_v62 = vmul.f32 %v1414_v53, %v1414_v53  ;;  %v1438_v9 = vadd.f32 %v680_v0, %v648_v3  ;;  %v682_v10 = vmax.f32 %v666_v5, 0.0 }
 0x14b   : > { %719 = vadd.xlane.f32.xlu0 %v702_v45  ;;  %v709_v11 = vmul.f32 %v1430_v2, %v1430_v2  ;;  %v1442_v12 = vadd.f32 %v679_v4, %v647_v6  ;;  %v681_v14 = vmax.f32 %v665_v7, 0.0  ;;  %v684_v20 = vmax.f32 %v668_v15, 0.0 }
 0x14c   : > { %723 = vadd.xlane.f32.xlu1 %v704_v42  ;;  %v712_v18 = vmul.f32 %v1438_v9, %v1438_v9  ;;  %v1450_v19 = vadd.f32 %v682_v10, %v650_v13  ;;  %v683_v24 = vmax.f32 %v667_v17, 0.0 }
 0x14d   : > { %v711_v21 = vmul.f32 %v1442_v12, %v1442_v12  ;;  %v1454_v22 = vadd.f32 %v681_v14, %v649_v16  ;;  %v1460_v28 = vadd.f32 %v684_v20, %v652_v23 }
 0x14e   : > { %v714_v26 = vmul.f32 %v1450_v19, %v1450_v19  ;;  %v1464_v30 = vadd.f32 %v683_v24, %v651_v25 }
 0x14f   : > { %725 = vadd.xlane.f32.xlu0 %v705_v55  ;;  %v713_v29 = vmul.f32 %v1454_v22, %v1454_v22  ;;  %v716_v33 = vmul.f32 %v1460_v28, %v1460_v28 }
 0x150   : > { %727 = vadd.xlane.f32.xlu1 %v706_v52  ;;  %v715_v34 = vmul.f32 %v1464_v30, %v1464_v30 }
 0x153   : > { %729 = vadd.xlane.f32.xlu0 %v707_v1 }
 0x154   : > { %731 = vadd.xlane.f32.xlu1 %v708_v62 }
 0x157   : > { %733 = vadd.xlane.f32.xlu0 %v709_v11 }
 0x158   : > { %735 = vadd.xlane.f32.xlu1 %v710_v8 }
 0x15b   : > { %737 = vadd.xlane.f32.xlu0 %v711_v21 }
 0x15c   : > { %739 = vadd.xlane.f32.xlu1 %v712_v18 }
 0x15f   : > { %741 = vadd.xlane.f32.xlu0 %v713_v29 }
 0x160   : > { %743 = vadd.xlane.f32.xlu1 %v714_v26 }
 0x163   : > { %745 = vadd.xlane.f32.xlu0 %v715_v34 }
 0x164   : > { %747 = vadd.xlane.f32.xlu1 %v716_v33 }
 0x1d4   : > { %v718_v37 = vpop.xlane.xlu0 %717 }
 0x1d5   : > { %v722_v35 = vpop.xlane.xlu1 %721  ;;  %v749_v39 = vmax.f32 %v718_v37, 1e-24 }
 0x1d6   : > { %v751_v36 = vmax.f32 %v722_v35, 1e-24 }
 0x1d8   : > { %1087 = vrsqrt.f32 %v751_v36  ;;  %v720_v42 = vpop.xlane.xlu0 %719 }
 0x1d9   : > { %1089 = vrsqrt.f32 %v749_v39  ;;  %v724_v40 = vpop.xlane.xlu1 %723  ;;  %v750_v44 = vmax.f32 %v720_v42, 1e-24 }
 0x1da   : > { %v752_v41 = vmax.f32 %v724_v40, 1e-24 }
 0x1dc   : > { %1091 = vrsqrt.f32 %v752_v41  ;;  %v726_v48 = vpop.xlane.xlu0 %725 }
 0x1dd   : > { %1093 = vrsqrt.f32 %v750_v44  ;;  %v728_v45 = vpop.xlane.xlu1 %727  ;;  %v753_v49 = vmax.f32 %v726_v48, 1e-24 }
 0x1de   : > { %v754_v47 = vmax.f32 %v728_v45, 1e-24 }
 0x1e0   : > { %1095 = vrsqrt.f32 %v754_v47  ;;  %v730_v54 = vpop.xlane.xlu0 %729 }
 0x1e1   : > { %1097 = vrsqrt.f32 %v753_v49  ;;  %v732_v50 = vpop.xlane.xlu1 %731  ;;  %v755_v58 = vmax.f32 %v730_v54, 1e-24 }
 0x1e2   : > { %v1088_v51 = vpop.eup %1087  ;;  %v756_v52 = vmax.f32 %v732_v50, 1e-24 }
 0x1e3   : > { %v1090_v55 = vpop.eup %1089  ;;  %v783_v57 = vmul.f32 %v1088_v51, %v1382_v27 }
 0x1e4   : > { %v781_v59 = vmul.f32 %v1090_v55, %v1386_v31  ;;  %1099 = vrsqrt.f32 %v756_v52  ;;  %v734_v0 = vpop.xlane.xlu0 %733 }
 0x1e5   : > { %799 = vst [vmem:[%s1291_s30 + $0x10] sm:$0xff] %v783_v57  ;;  %1101 = vrsqrt.f32 %v755_v58  ;;  %v736_v60 = vpop.xlane.xlu1 %735  ;;  %v757_v4 = vmax.f32 %v734_v0, 1e-24 }
 0x1e6   : > { %v1092_v61 = vpop.eup %1091  ;;  %797 = vst [vmem:[%s1291_s30] sm:$0xff] %v781_v59  ;;  %v758_v62 = vmax.f32 %v736_v60, 1e-24 }
 0x1e7   : > { %v1094_v1 = vpop.eup %1093  ;;  %v784_v3 = vmul.f32 %v1092_v61, %v1388_v32 }
 0x1e8   : > { %v782_v27 = vmul.f32 %v1094_v1, %v1394_v38  ;;  %1103 = vrsqrt.f32 %v758_v62  ;;  %v738_v7 = vpop.xlane.xlu0 %737 }
 0x1e9   : > { %800 = vst [vmem:[%s1291_s30 + $0x18] sm:$0xff] %v784_v3  ;;  %1105 = vrsqrt.f32 %v757_v4  ;;  %v740_v31 = vpop.xlane.xlu1 %739  ;;  %v759_v11 = vmax.f32 %v738_v7, 1e-24 }
 0x1ea   : > { %v1096_v5 = vpop.eup %1095  ;;  %798 = vst [vmem:[%s1291_s30 + $0x8] sm:$0xff] %v782_v27  ;;  %v760_v6 = vmax.f32 %v740_v31, 1e-24 }
 0x1eb   : > { %v1098_v8 = vpop.eup %1097  ;;  %v786_v10 = vmul.f32 %v1096_v5, %v1402_v43 }
 0x1ec   : > { %v785_v32 = vmul.f32 %v1098_v8, %v1406_v46  ;;  %1107 = vrsqrt.f32 %v760_v6  ;;  %v742_v15 = vpop.xlane.xlu0 %741 }
 0x1ed   : > { %802 = vst [vmem:[%s1291_s30 + $0x28] sm:$0xff] %v786_v10  ;;  %1109 = vrsqrt.f32 %v759_v11  ;;  %v744_v38 = vpop.xlane.xlu1 %743  ;;  %v761_v18 = vmax.f32 %v742_v15, 1e-24 }
 0x1ee   : > { %v1100_v13 = vpop.eup %1099  ;;  %801 = vst [vmem:[%s1291_s30 + $0x20] sm:$0xff] %v785_v32  ;;  %v762_v14 = vmax.f32 %v744_v38, 1e-24 }
 0x1ef   : > { %v1102_v16 = vpop.eup %1101  ;;  %v788_v17 = vmul.f32 %v1100_v13, %v1414_v53 }
 0x1f0   : > { %v787_v43 = vmul.f32 %v1102_v16, %v1418_v56  ;;  %1111 = vrsqrt.f32 %v762_v14  ;;  %v746_v23 = vpop.xlane.xlu0 %745 }
 0x1f1   : > { %804 = vst [vmem:[%s1291_s30 + $0x38] sm:$0xff] %v788_v17  ;;  %1113 = vrsqrt.f32 %v761_v18  ;;  %v748_v46 = vpop.xlane.xlu1 %747  ;;  %v763_v26 = vmax.f32 %v746_v23, 1e-24 }
 0x1f2   : > { %v1104_v20 = vpop.eup %1103  ;;  %803 = vst [vmem:[%s1291_s30 + $0x30] sm:$0xff] %v787_v43  ;;  %v764_v21 = vmax.f32 %v748_v46, 1e-24 }
 0x1f3   : > { %v1106_v24 = vpop.eup %1105  ;;  %v790_v25 = vmul.f32 %v1104_v20, %v1426_v63 }
 0x1f4   : > { %v789_v53 = vmul.f32 %v1106_v24, %v1430_v2  ;;  %1115 = vrsqrt.f32 %v764_v21 }
 0x1f5   : > { %806 = vst [vmem:[%s1291_s30 + $0x48] sm:$0xff] %v790_v25  ;;  %1117 = vrsqrt.f32 %v763_v26 }
 0x1f6   : > { %v1108_v56 = vpop.eup %1107  ;;  %805 = vst [vmem:[%s1291_s30 + $0x40] sm:$0xff] %v789_v53 }
 0x1f7   : > { %v1110_v29 = vpop.eup %1109  ;;  %v792_v33 = vmul.f32 %v1108_v56, %v1438_v9 }
 0x1f8   : > { %v791_v34 = vmul.f32 %v1110_v29, %v1442_v12 }
 0x1f9   : > { %808 = vst [vmem:[%s1291_s30 + $0x58] sm:$0xff] %v792_v33 }
 0x1fa   : > { %v1112_v35 = vpop.eup %1111  ;;  %807 = vst [vmem:[%s1291_s30 + $0x50] sm:$0xff] %v791_v34 }
 0x1fb   : > { %v1114_v63 = vpop.eup %1113  ;;  %v794_v36 = vmul.f32 %v1112_v35, %v1450_v19 }
 0x1fc   : > { %v793_v2 = vmul.f32 %v1114_v63, %v1454_v22 }
 0x1fd   : > { %810 = vst [vmem:[%s1291_s30 + $0x68] sm:$0xff] %v794_v36 }
 0x1fe   : > { %v1116_v37 = vpop.eup %1115  ;;  %809 = vst [vmem:[%s1291_s30 + $0x60] sm:$0xff] %v793_v2 }
 0x1ff   : > { %v1118_v39 = vpop.eup %1117  ;;  %v796_v40 = vmul.f32 %v1116_v37, %v1460_v28 }
 0x200   : > { %v795_v41 = vmul.f32 %v1118_v39, %v1464_v30 }
 0x201   : > { %812 = vst [vmem:[%s1291_s30 + $0x78] sm:$0xff] %v796_v40 }
 0x202   : > { %811 = vst [vmem:[%s1291_s30 + $0x70] sm:$0xff] %v795_v41 }
 0x203 PF: > { %s13_s18 = sadd.s32 1, %s1173_s18   ;;  %s1527_s12 = smov %s1153_s13 }
 0x204   : > { %p10_p1 = scmp.ge.s32.totalorder %s13_s18, 6   ;;  %s1528_s13 = smov %s1246_s25 }
 0x205   : > { %s1529_s14 = smov %s1165_s16  ;;  %s1530_s15 = smov %s1169_s17 }
 0x206   : > { %s1531_s16 = smov %s1534_s19  ;;  %s1532_s17 = smov %s1538_s20 }
 0x207   :  { %12 = sbr.rel (!%p10_p1) target bundleno = 4 (0x4), region = 126 }

</bundles_post_ra>
